<compile_context>
chip_gen: v6e
topology: v6e:2x2x1
jax: 0.10.0
libtpu: 0.0.40
codegen_flags: <defaults>
</compile_context>

<pallas_src>
import numpy as np
import jax
import jax.numpy as jnp
from jax.experimental import pallas as pl
from jax.experimental.pallas import tpu as pltpu

B = 8             # batch
C = 16            # in_channels (even -> both coupling halves are C // 2)
HIDDEN = 32       # hidden_dim
DEPTH = 2         # hidden_depth (number of hidden Linear+LeakyReLU repeats)
N_FLOWS = 2
HALF = C // 2
H2 = 2 * HIDDEN   # fused s/t hidden width
NEG_SLOPE = 0.01  # nn.LeakyReLU default negative_slope

# ---- packed-buffer index helpers (shared by kernel trace and host packer) -------------
N_COUP = 2 * N_FLOWS              # total affine couplings
SLABS_PER_COUP = 2 + DEPTH        # w_in, DEPTH x w_mid, w_out

def IN_W(k):      return k * SLABS_PER_COUP
def MID_W(k, d):  return k * SLABS_PER_COUP + 1 + d
def OUT_W(k):     return k * SLABS_PER_COUP + 1 + DEPTH
def MIXV_W(f):    return N_COUP * SLABS_PER_COUP + 2 * f        # mix rows that multiply v
def MIXU_W(f):    return N_COUP * SLABS_PER_COUP + 2 * f + 1    # mix rows that multiply u
N_WSLABS = N_COUP * SLABS_PER_COUP + 2 * N_FLOWS

def IN_B(k):      return k * SLABS_PER_COUP
def MID_B(k, d):  return k * SLABS_PER_COUP + 1 + d
def OUT_B(k):     return k * SLABS_PER_COUP + 1 + DEPTH
def MIX_B(f):     return N_COUP * SLABS_PER_COUP + f            # only f < N_FLOWS-1 used
ROW_S0 = N_COUP * SLABS_PER_COUP + (N_FLOWS - 1)                # scale_0
ROW_B0 = ROW_S0 + 1                                             # scale_0 * loc_0
N_BROWS = ROW_B0 + 1


def flow_kernel(x_ref, wts_ref, bias_ref, anld_ref, out_ref, logdet_ref):
    """Whole flow chain in one grid-less invocation; bf16 MXU operands, f32 elsewhere."""
    bf16 = jnp.bfloat16

    def coupling(z_apply, z_keep, k):
        """Fused s/t MLP on z_apply -> (updated keep-half, s)."""
        a = jnp.dot(z_apply.astype(bf16), wts_ref[IN_W(k), :HALF, :],
                    preferred_element_type=jnp.float32) + bias_ref[IN_B(k), :][None, :]
        a = jnp.maximum(a, NEG_SLOPE * a)
        for d in range(DEPTH):
            a = jnp.dot(a.astype(bf16), wts_ref[MID_W(k, d)],
                        preferred_element_type=jnp.float32) + bias_ref[MID_B(k, d), :][None, :]
            a = jnp.maximum(a, NEG_SLOPE * a)
        st = jnp.dot(a.astype(bf16), wts_ref[OUT_W(k), :, :2 * HALF],
                     preferred_element_type=jnp.float32) + bias_ref[OUT_B(k), :2 * HALF][None, :]
        s = jnp.tanh(st[:, :HALF])
        t = st[:, HALF:]
        return z_keep * jnp.exp(s) + t, s

    # Flow-0 ActNorm, applied per half: h = scale0 * x + scale0*loc0 (host-precomputed rows)
    u = x_ref[:, :HALF] * bias_ref[ROW_S0, :HALF][None, :] + bias_ref[ROW_B0, :HALF][None, :]
    v = x_ref[:, HALF:] * bias_ref[ROW_S0, HALF:C][None, :] + bias_ref[ROW_B0, HALF:C][None, :]

    s_acc = jnp.zeros((B, HALF), jnp.float32)

    for f in range(N_FLOWS):                          # static unrolled flow loop
        # coupling i=0: apply-half u, keep-half v
        v, s = coupling(u, v, 2 * f)
        s_acc += s
        # coupling i=1 (the torch "swap" is just role exchange): apply v, keep u
        u, s = coupling(v, u, 2 * f + 1)
        s_acc += s
        # Logical channel layout after both couplings is h = [v, u].  The mix matrix is
        # this flow's shuffle (with the next flow's ActNorm folded in host-side),
        # computed concat-free as two half matmuls.
        h = (jnp.dot(v.astype(bf16), wts_ref[MIXV_W(f), :HALF, :C],
                     preferred_element_type=jnp.float32)
             + jnp.dot(u.astype(bf16), wts_ref[MIXU_W(f), :HALF, :C],
                       preferred_element_type=jnp.float32))
        if f < N_FLOWS - 1:
            h = h + bias_ref[MIX_B(f), :C][None, :]   # next flow's scale*loc
            u = h[:, :HALF]
            v = h[:, HALF:]
        else:
            out_ref[...] = h                          # last shuffle done in-kernel

    # data-independent sum_f sum(log|scale_f|), added once from SMEM
    logdet_ref[...] = jnp.sum(s_acc, axis=1, keepdims=True) + anld_ref[0]


@jax.jit
def flow_forward(x, wts, bias, anld):
    vmem = pl.BlockSpec(memory_space=pltpu.MemorySpace.VMEM)
    smem = pl.BlockSpec(memory_space=pltpu.MemorySpace.SMEM)
    out, logdet = pl.pallas_call(
        flow_kernel,
        out_shape=(jax.ShapeDtypeStruct((B, C), jnp.float32),
                   jax.ShapeDtypeStruct((B, 1), jnp.float32)),
        in_specs=[
            vmem,   # x                 (B, C)                 f32
            vmem,   # weight slabs      (N_WSLABS, 2H, 2H)     bf16
            vmem,   # bias rows         (N_BROWS, 2H)          f32
            smem,   # logdet constant   (1,)                   f32
        ],
        out_specs=(vmem, vmem),
    )(x, wts, bias, anld)
    return out, logdet[:, 0]


# ----------------------------------------------------------------------------
# Parameter construction / packing / pure-JAX reference
# ----------------------------------------------------------------------------

def init_params(key):
    """Deterministic synthetic parameters (PyTorch nn.Linear-style uniform init)."""
    keys = jax.random.split(key, 8)
    loc = 0.1 * jax.random.normal(keys[0], (N_FLOWS, C), jnp.float32)
    scale = 1.0 + 0.1 * jax.random.normal(keys[1], (N_FLOWS, C), jnp.float32)
    k_in = 1.0 / jnp.sqrt(HALF)
    k_h = 1.0 / jnp.sqrt(HIDDEN)
    # stacked nets per flow are [s0, t0, s1, t1]; weights are transposed (in, out)
    w_in = jax.random.uniform(keys[2], (N_FLOWS, 4, HALF, HIDDEN), jnp.float32, -k_in, k_in)
    b_in = jax.random.uniform(keys[3], (N_FLOWS, 4, HIDDEN), jnp.float32, -k_in, k_in)
    w_mid = jax.random.uniform(keys[4], (N_FLOWS, 4 * DEPTH, HIDDEN, HIDDEN), jnp.float32, -k_h, k_h)
    b_mid = jax.random.uniform(keys[5], (N_FLOWS, 4 * DEPTH, HIDDEN), jnp.float32, -k_h, k_h)
    w_out = jax.random.uniform(keys[6], (N_FLOWS, 4, HIDDEN, HALF), jnp.float32, -k_h, k_h)
    b_out = jax.random.uniform(keys[7], (N_FLOWS, 4, HALF), jnp.float32, -k_h, k_h)
    perm_keys = jax.random.split(jax.random.fold_in(key, 123), N_FLOWS)
    perm_idx = jnp.stack([jax.random.permutation(perm_keys[f], C) for f in range(N_FLOWS)])
    # y = x @ perm_mat  ==  x[:, perm_idx]
    perm_mat = jnp.stack([jax.nn.one_hot(perm_idx[f], C, dtype=jnp.float32).T
                          for f in range(N_FLOWS)])
    return dict(loc=loc, scale=scale, w_in=w_in, b_in=b_in, w_mid=w_mid, b_mid=b_mid,
                w_out=w_out, b_out=b_out, perm_idx=perm_idx, perm_mat=perm_mat)


def pack_kernel_params(p):
    """One-time host packing.

    * Each coupling's s and t nets are fused into one wider net (input layer concat,
      hidden / output layers block-diagonal).  Output columns: [0:HALF]=s (pre-tanh),
      [HALF:2*HALF]=t.
    * Each flow's shuffle P_f is fused with the NEXT flow's ActNorm into a mix matrix
      M_f = P_f @ diag(scale_{f+1}) (bias scale_{f+1}*loc_{f+1}); the last flow's mix is
      just P_last.  M_f is split row-wise into the v-part (rows 0:HALF) and u-part
      (rows HALF:C), each stored at sublane offset 0 of its own slab.
    * Everything lands in ONE bf16 weight-slab stack + ONE f32 bias-row stack + one
      f32 scalar (total data-independent logdet).
    """
    w_in = np.asarray(p["w_in"]); b_in = np.asarray(p["b_in"])
    w_mid = np.asarray(p["w_mid"]); b_mid = np.asarray(p["b_mid"])
    w_out = np.asarray(p["w_out"]); b_out = np.asarray(p["b_out"])
    scale = np.asarray(p["scale"]); loc = np.asarray(p["loc"])
    perm_mat = np.asarray(p["perm_mat"])

    wts = np.zeros((N_WSLABS, H2, H2), np.float32)
    bias = np.zeros((N_BROWS, H2), np.float32)

    for f in range(N_FLOWS):
        for i in range(2):
            si, ti = 2 * i, 2 * i + 1      # [s0, t0, s1, t1]
            k = 2 * f + i
            wts[IN_W(k), :HALF, :HIDDEN] = w_in[f, si]
            wts[IN_W(k), :HALF, HIDDEN:] = w_in[f, ti]
            bias[IN_B(k), :HIDDEN] = b_in[f, si]
            bias[IN_B(k), HIDDEN:] = b_in[f, ti]
            for d in range(DEPTH):
                wts[MID_W(k, d), :HIDDEN, :HIDDEN] = w_mid[f, si * DEPTH + d]
                wts[MID_W(k, d), HIDDEN:, HIDDEN:] = w_mid[f, ti * DEPTH + d]
                bias[MID_B(k, d), :HIDDEN] = b_mid[f, si * DEPTH + d]
                bias[MID_B(k, d), HIDDEN:] = b_mid[f, ti * DEPTH + d]
            wts[OUT_W(k), :HIDDEN, :HALF] = w_out[f, si]
            wts[OUT_W(k), HIDDEN:, HALF:2 * HALF] = w_out[f, ti]
            bias[OUT_B(k), :HALF] = b_out[f, si]
            bias[OUT_B(k), HALF:2 * HALF] = b_out[f, ti]

        M = perm_mat[f].copy()                                   # (C, C)
        if f < N_FLOWS - 1:
            M = M * scale[f + 1][None, :]                        # P_f @ diag(scale_{f+1})
            bias[MIX_B(f), :C] = scale[f + 1] * loc[f + 1]
        wts[MIXV_W(f), :HALF, :C] = M[:HALF, :]                  # multiplies v
        wts[MIXU_W(f), :HALF, :C] = M[HALF:, :]                  # multiplies u

    # flow-0 ActNorm: h = scale0 * x + scale0*loc0
    bias[ROW_S0, :C] = scale[0]
    bias[ROW_B0, :C] = scale[0] * loc[0]

    anld_total = np.float32(np.sum(np.log(np.abs(scale))))       # data-independent logdet
    return (jnp.asarray(wts, jnp.bfloat16),
            jnp.asarray(bias, jnp.float32),
            jnp.asarray([anld_total], jnp.float32))


def _mlp(z, net, w_in, b_in, w_mid, b_mid, w_out, b_out, use_tanh):
    """Reference BasicFullyConnectedNet (unfused, pure f32)."""
    h = jnp.dot(z, w_in[net]) + b_in[net][None, :]
    h = jnp.where(h > 0, h, NEG_SLOPE * h)
    for d in range(DEPTH):
        h = jnp.dot(h, w_mid[net * DEPTH + d]) + b_mid[net * DEPTH + d][None, :]
        h = jnp.where(h > 0, h, NEG_SLOPE * h)
    out = jnp.dot(h, w_out[net]) + b_out[net][None, :]
    return jnp.tanh(out) if use_tanh else out


def flow_reference(x, p):
    """Pure-JAX f32 reference reproducing the eval-mode forward."""
    h = x
    logdet = jnp.zeros((B,), jnp.float32)
    for f in range(N_FLOWS):
        scale = p["scale"][f]
        h = scale[None, :] * (h + p["loc"][f][None, :])
        logdet = logdet + jnp.sum(jnp.log(jnp.abs(scale)))
        for i in range(2):
            if i % 2 != 0:
                h = jnp.concatenate([h[:, HALF:], h[:, :HALF]], axis=1)
            x0, x1 = h[:, :HALF], h[:, HALF:]
            si, ti = 2 * i, 2 * i + 1
            s = _mlp(x0, si, p["w_in"][f], p["b_in"][f], p["w_mid"][f], p["b_mid"][f],
                     p["w_out"][f], p["b_out"][f], use_tanh=True)
            t = _mlp(x0, ti, p["w_in"][f], p["b_in"][f], p["w_mid"][f], p["b_mid"][f],
                     p["w_out"][f], p["b_out"][f], use_tanh=False)
            x1 = x1 * jnp.exp(s) + t
            h = jnp.concatenate([x0, x1], axis=1)
            logdet = logdet + jnp.sum(s, axis=1)
        h = h[:, p["perm_idx"][f]]
    return h, logdet


# TODO(synk): data-dependent ActNorm initialization (training mode) and the reverse()/
# sample() inverse path are not implemented; this covers the eval-mode forward.

if __name__ == "__main__":
    key = jax.random.PRNGKey(0)
    params = init_params(jax.random.fold_in(key, 1))
    wts, bias, anld = pack_kernel_params(params)

    # The module takes (B, C, 1, 1) and squeezes the trailing spatial dims itself.
    x4 = jax.random.normal(key, (B, C, 1, 1), jnp.float32)
    x = x4.reshape(B, C)

    out, logdet = flow_forward(x, wts, bias, anld)
    out, logdet = jax.block_until_ready((out, logdet))

    ref_out, ref_logdet = flow_reference(x, params)
    assert out.shape == (B, C) and logdet.shape == (B,)
    # bf16 MXU operands (review-approved) introduce ~1e-3-level per-element drift; logdet
    # is a 32-term sum of such values, so it gets a slightly looser absolute tolerance.
    assert jnp.allclose(out, ref_out, rtol=2e-2, atol=2e-2), "output mismatch vs reference"
    assert jnp.allclose(logdet, ref_logdet, rtol=2e-2, atol=5e-2), "logdet mismatch vs reference"
    print("KERNEL_OK")
</pallas_src>

<mosaic_0001>
module attributes {stable_mosaic.version = 11 : i64} {
  func.func @flow_kernel(%arg0: memref<8x16xf32, #tpu.memory_space<vmem>>, %arg1: memref<20x64x64xbf16, #tpu.memory_space<vmem>>, %arg2: memref<19x64xf32, #tpu.memory_space<vmem>>, %arg3: memref<1xf32, #tpu.memory_space<smem>>, %arg4: memref<8x16xf32, #tpu.memory_space<vmem>>, %arg5: memref<8x1xf32, #tpu.memory_space<vmem>>) attributes {dimension_semantics = [], scalar_prefetch = 0 : i64, scratch_operands = 0 : i64, tpu.core_type = #tpu.core_type<tc>} {
    %c0 = arith.constant 0 : index
    %c0_0 = arith.constant 0 : index
    %0 = vector.load %arg0[%c0, %c0_0] : memref<8x16xf32, #tpu.memory_space<vmem>>, vector<8x8xf32>
    %c17 = arith.constant 17 : index
    %c0_1 = arith.constant 0 : index
    %1 = vector.load %arg2[%c17, %c0_1] : memref<19x64xf32, #tpu.memory_space<vmem>>, vector<1x8xf32>
    %2 = vector.shape_cast %1 : vector<1x8xf32> to vector<8xf32>
    %3 = vector.shape_cast %2 : vector<8xf32> to vector<1x8xf32>
    %4 = vector.broadcast %3 : vector<1x8xf32> to vector<8x8xf32>
    %5 = arith.mulf %0, %4 : vector<8x8xf32>
    %c18 = arith.constant 18 : index
    %c0_2 = arith.constant 0 : index
    %6 = vector.load %arg2[%c18, %c0_2] : memref<19x64xf32, #tpu.memory_space<vmem>>, vector<1x8xf32>
    %7 = vector.shape_cast %6 : vector<1x8xf32> to vector<8xf32>
    %8 = vector.shape_cast %7 : vector<8xf32> to vector<1x8xf32>
    %9 = vector.broadcast %8 : vector<1x8xf32> to vector<8x8xf32>
    %10 = arith.addf %5, %9 : vector<8x8xf32>
    %c0_3 = arith.constant 0 : index
    %c8 = arith.constant 8 : index
    %11 = vector.load %arg0[%c0_3, %c8] : memref<8x16xf32, #tpu.memory_space<vmem>>, vector<8x8xf32>
    %c17_4 = arith.constant 17 : index
    %c8_5 = arith.constant 8 : index
    %12 = vector.load %arg2[%c17_4, %c8_5] : memref<19x64xf32, #tpu.memory_space<vmem>>, vector<1x8xf32>
    %13 = vector.shape_cast %12 : vector<1x8xf32> to vector<8xf32>
    %14 = vector.shape_cast %13 : vector<8xf32> to vector<1x8xf32>
    %15 = vector.broadcast %14 : vector<1x8xf32> to vector<8x8xf32>
    %16 = arith.mulf %11, %15 : vector<8x8xf32>
    %c18_6 = arith.constant 18 : index
    %c8_7 = arith.constant 8 : index
    %17 = vector.load %arg2[%c18_6, %c8_7] : memref<19x64xf32, #tpu.memory_space<vmem>>, vector<1x8xf32>
    %18 = vector.shape_cast %17 : vector<1x8xf32> to vector<8xf32>
    %19 = vector.shape_cast %18 : vector<8xf32> to vector<1x8xf32>
    %20 = vector.broadcast %19 : vector<1x8xf32> to vector<8x8xf32>
    %21 = arith.addf %16, %20 : vector<8x8xf32>
    %cst = arith.constant 0.000000e+00 : f32
    %22 = vector.broadcast %cst : f32 to vector<8x8xf32>
    %23 = arith.truncf %10 : vector<8x8xf32> to vector<8x8xbf16>
    %c0_8 = arith.constant 0 : index
    %c0_9 = arith.constant 0 : index
    %c0_10 = arith.constant 0 : index
    %24 = vector.load %arg1[%c0_8, %c0_9, %c0_10] : memref<20x64x64xbf16, #tpu.memory_space<vmem>>, vector<1x8x64xbf16>
    %25 = vector.shape_cast %24 : vector<1x8x64xbf16> to vector<8x64xbf16>
    %cst_11 = arith.constant dense<0.000000e+00> : vector<8x64xf32>
    %26 = tpu.matmul %23, %25, %cst_11 {dimension_numbers = #tpu.dot_dimension_numbers<[1], [0], [0], [1], [0, 0, 1, 1], [], []>} : vector<8x8xbf16>, vector<8x64xbf16>, vector<8x64xf32> -> vector<8x64xf32>
    %c0_12 = arith.constant 0 : index
    %c0_13 = arith.constant 0 : index
    %27 = vector.load %arg2[%c0_12, %c0_13] : memref<19x64xf32, #tpu.memory_space<vmem>>, vector<1x64xf32>
    %28 = vector.shape_cast %27 : vector<1x64xf32> to vector<64xf32>
    %29 = vector.shape_cast %28 : vector<64xf32> to vector<1x64xf32>
    %30 = vector.broadcast %29 : vector<1x64xf32> to vector<8x64xf32>
    %31 = arith.addf %26, %30 : vector<8x64xf32>
    %cst_14 = arith.constant 0.00999999977 : f32
    %32 = vector.broadcast %cst_14 : f32 to vector<8x64xf32>
    %33 = arith.mulf %32, %31 : vector<8x64xf32>
    %34 = arith.maximumf %31, %33 : vector<8x64xf32>
    %35 = arith.truncf %34 : vector<8x64xf32> to vector<8x64xbf16>
    %c1 = arith.constant 1 : index
    %c0_15 = arith.constant 0 : index
    %c0_16 = arith.constant 0 : index
    %36 = vector.load %arg1[%c1, %c0_15, %c0_16] : memref<20x64x64xbf16, #tpu.memory_space<vmem>>, vector<1x64x64xbf16>
    %37 = vector.shape_cast %36 : vector<1x64x64xbf16> to vector<64x64xbf16>
    %cst_17 = arith.constant dense<0.000000e+00> : vector<8x64xf32>
    %38 = tpu.matmul %35, %37, %cst_17 {dimension_numbers = #tpu.dot_dimension_numbers<[1], [0], [0], [1], [0, 0, 1, 1], [], []>} : vector<8x64xbf16>, vector<64x64xbf16>, vector<8x64xf32> -> vector<8x64xf32>
    %c1_18 = arith.constant 1 : index
    %c0_19 = arith.constant 0 : index
    %39 = vector.load %arg2[%c1_18, %c0_19] : memref<19x64xf32, #tpu.memory_space<vmem>>, vector<1x64xf32>
    %40 = vector.shape_cast %39 : vector<1x64xf32> to vector<64xf32>
    %41 = vector.shape_cast %40 : vector<64xf32> to vector<1x64xf32>
    %42 = vector.broadcast %41 : vector<1x64xf32> to vector<8x64xf32>
    %43 = arith.addf %38, %42 : vector<8x64xf32>
    %cst_20 = arith.constant 0.00999999977 : f32
    %44 = vector.broadcast %cst_20 : f32 to vector<8x64xf32>
    %45 = arith.mulf %44, %43 : vector<8x64xf32>
    %46 = arith.maximumf %43, %45 : vector<8x64xf32>
    %47 = arith.truncf %46 : vector<8x64xf32> to vector<8x64xbf16>
    %c2 = arith.constant 2 : index
    %c0_21 = arith.constant 0 : index
    %c0_22 = arith.constant 0 : index
    %48 = vector.load %arg1[%c2, %c0_21, %c0_22] : memref<20x64x64xbf16, #tpu.memory_space<vmem>>, vector<1x64x64xbf16>
    %49 = vector.shape_cast %48 : vector<1x64x64xbf16> to vector<64x64xbf16>
    %cst_23 = arith.constant dense<0.000000e+00> : vector<8x64xf32>
    %50 = tpu.matmul %47, %49, %cst_23 {dimension_numbers = #tpu.dot_dimension_numbers<[1], [0], [0], [1], [0, 0, 1, 1], [], []>} : vector<8x64xbf16>, vector<64x64xbf16>, vector<8x64xf32> -> vector<8x64xf32>
    %c2_24 = arith.constant 2 : index
    %c0_25 = arith.constant 0 : index
    %51 = vector.load %arg2[%c2_24, %c0_25] : memref<19x64xf32, #tpu.memory_space<vmem>>, vector<1x64xf32>
    %52 = vector.shape_cast %51 : vector<1x64xf32> to vector<64xf32>
    %53 = vector.shape_cast %52 : vector<64xf32> to vector<1x64xf32>
    %54 = vector.broadcast %53 : vector<1x64xf32> to vector<8x64xf32>
    %55 = arith.addf %50, %54 : vector<8x64xf32>
    %cst_26 = arith.constant 0.00999999977 : f32
    %56 = vector.broadcast %cst_26 : f32 to vector<8x64xf32>
    %57 = arith.mulf %56, %55 : vector<8x64xf32>
    %58 = arith.maximumf %55, %57 : vector<8x64xf32>
    %59 = arith.truncf %58 : vector<8x64xf32> to vector<8x64xbf16>
    %c3 = arith.constant 3 : index
    %c0_27 = arith.constant 0 : index
    %c0_28 = arith.constant 0 : index
    %60 = vector.load %arg1[%c3, %c0_27, %c0_28] : memref<20x64x64xbf16, #tpu.memory_space<vmem>>, vector<1x64x16xbf16>
    %61 = vector.shape_cast %60 : vector<1x64x16xbf16> to vector<64x16xbf16>
    %cst_29 = arith.constant dense<0.000000e+00> : vector<8x16xf32>
    %62 = tpu.matmul %59, %61, %cst_29 {dimension_numbers = #tpu.dot_dimension_numbers<[1], [0], [0], [1], [0, 0, 1, 1], [], []>} : vector<8x64xbf16>, vector<64x16xbf16>, vector<8x16xf32> -> vector<8x16xf32>
    %c3_30 = arith.constant 3 : index
    %c0_31 = arith.constant 0 : index
    %63 = vector.load %arg2[%c3_30, %c0_31] : memref<19x64xf32, #tpu.memory_space<vmem>>, vector<1x16xf32>
    %64 = vector.shape_cast %63 : vector<1x16xf32> to vector<16xf32>
    %65 = vector.shape_cast %64 : vector<16xf32> to vector<1x16xf32>
    %66 = vector.broadcast %65 : vector<1x16xf32> to vector<8x16xf32>
    %67 = arith.addf %62, %66 : vector<8x16xf32>
    %68 = vector.extract_strided_slice %67 {offsets = [0, 0], sizes = [8, 8], strides = [1, 1]} : vector<8x16xf32> to vector<8x8xf32>
    %69 = math.tanh %68 : vector<8x8xf32>
    %70 = vector.extract_strided_slice %67 {offsets = [0, 8], sizes = [8, 8], strides = [1, 1]} : vector<8x16xf32> to vector<8x8xf32>
    %71 = math.exp %69 : vector<8x8xf32>
    %72 = arith.mulf %21, %71 : vector<8x8xf32>
    %73 = arith.addf %72, %70 : vector<8x8xf32>
    %74 = arith.addf %22, %69 : vector<8x8xf32>
    %75 = arith.truncf %73 : vector<8x8xf32> to vector<8x8xbf16>
    %c4 = arith.constant 4 : index
    %c0_32 = arith.constant 0 : index
    %c0_33 = arith.constant 0 : index
    %76 = vector.load %arg1[%c4, %c0_32, %c0_33] : memref<20x64x64xbf16, #tpu.memory_space<vmem>>, vector<1x8x64xbf16>
    %77 = vector.shape_cast %76 : vector<1x8x64xbf16> to vector<8x64xbf16>
    %cst_34 = arith.constant dense<0.000000e+00> : vector<8x64xf32>
    %78 = tpu.matmul %75, %77, %cst_34 {dimension_numbers = #tpu.dot_dimension_numbers<[1], [0], [0], [1], [0, 0, 1, 1], [], []>} : vector<8x8xbf16>, vector<8x64xbf16>, vector<8x64xf32> -> vector<8x64xf32>
    %c4_35 = arith.constant 4 : index
    %c0_36 = arith.constant 0 : index
    %79 = vector.load %arg2[%c4_35, %c0_36] : memref<19x64xf32, #tpu.memory_space<vmem>>, vector<1x64xf32>
    %80 = vector.shape_cast %79 : vector<1x64xf32> to vector<64xf32>
    %81 = vector.shape_cast %80 : vector<64xf32> to vector<1x64xf32>
    %82 = vector.broadcast %81 : vector<1x64xf32> to vector<8x64xf32>
    %83 = arith.addf %78, %82 : vector<8x64xf32>
    %cst_37 = arith.constant 0.00999999977 : f32
    %84 = vector.broadcast %cst_37 : f32 to vector<8x64xf32>
    %85 = arith.mulf %84, %83 : vector<8x64xf32>
    %86 = arith.maximumf %83, %85 : vector<8x64xf32>
    %87 = arith.truncf %86 : vector<8x64xf32> to vector<8x64xbf16>
    %c5 = arith.constant 5 : index
    %c0_38 = arith.constant 0 : index
    %c0_39 = arith.constant 0 : index
    %88 = vector.load %arg1[%c5, %c0_38, %c0_39] : memref<20x64x64xbf16, #tpu.memory_space<vmem>>, vector<1x64x64xbf16>
    %89 = vector.shape_cast %88 : vector<1x64x64xbf16> to vector<64x64xbf16>
    %cst_40 = arith.constant dense<0.000000e+00> : vector<8x64xf32>
    %90 = tpu.matmul %87, %89, %cst_40 {dimension_numbers = #tpu.dot_dimension_numbers<[1], [0], [0], [1], [0, 0, 1, 1], [], []>} : vector<8x64xbf16>, vector<64x64xbf16>, vector<8x64xf32> -> vector<8x64xf32>
    %c5_41 = arith.constant 5 : index
    %c0_42 = arith.constant 0 : index
    %91 = vector.load %arg2[%c5_41, %c0_42] : memref<19x64xf32, #tpu.memory_space<vmem>>, vector<1x64xf32>
    %92 = vector.shape_cast %91 : vector<1x64xf32> to vector<64xf32>
    %93 = vector.shape_cast %92 : vector<64xf32> to vector<1x64xf32>
    %94 = vector.broadcast %93 : vector<1x64xf32> to vector<8x64xf32>
    %95 = arith.addf %90, %94 : vector<8x64xf32>
    %cst_43 = arith.constant 0.00999999977 : f32
    %96 = vector.broadcast %cst_43 : f32 to vector<8x64xf32>
    %97 = arith.mulf %96, %95 : vector<8x64xf32>
    %98 = arith.maximumf %95, %97 : vector<8x64xf32>
    %99 = arith.truncf %98 : vector<8x64xf32> to vector<8x64xbf16>
    %c6 = arith.constant 6 : index
    %c0_44 = arith.constant 0 : index
    %c0_45 = arith.constant 0 : index
    %100 = vector.load %arg1[%c6, %c0_44, %c0_45] : memref<20x64x64xbf16, #tpu.memory_space<vmem>>, vector<1x64x64xbf16>
    %101 = vector.shape_cast %100 : vector<1x64x64xbf16> to vector<64x64xbf16>
    %cst_46 = arith.constant dense<0.000000e+00> : vector<8x64xf32>
    %102 = tpu.matmul %99, %101, %cst_46 {dimension_numbers = #tpu.dot_dimension_numbers<[1], [0], [0], [1], [0, 0, 1, 1], [], []>} : vector<8x64xbf16>, vector<64x64xbf16>, vector<8x64xf32> -> vector<8x64xf32>
    %c6_47 = arith.constant 6 : index
    %c0_48 = arith.constant 0 : index
    %103 = vector.load %arg2[%c6_47, %c0_48] : memref<19x64xf32, #tpu.memory_space<vmem>>, vector<1x64xf32>
    %104 = vector.shape_cast %103 : vector<1x64xf32> to vector<64xf32>
    %105 = vector.shape_cast %104 : vector<64xf32> to vector<1x64xf32>
    %106 = vector.broadcast %105 : vector<1x64xf32> to vector<8x64xf32>
    %107 = arith.addf %102, %106 : vector<8x64xf32>
    %cst_49 = arith.constant 0.00999999977 : f32
    %108 = vector.broadcast %cst_49 : f32 to vector<8x64xf32>
    %109 = arith.mulf %108, %107 : vector<8x64xf32>
    %110 = arith.maximumf %107, %109 : vector<8x64xf32>
    %111 = arith.truncf %110 : vector<8x64xf32> to vector<8x64xbf16>
    %c7 = arith.constant 7 : index
    %c0_50 = arith.constant 0 : index
    %c0_51 = arith.constant 0 : index
    %112 = vector.load %arg1[%c7, %c0_50, %c0_51] : memref<20x64x64xbf16, #tpu.memory_space<vmem>>, vector<1x64x16xbf16>
    %113 = vector.shape_cast %112 : vector<1x64x16xbf16> to vector<64x16xbf16>
    %cst_52 = arith.constant dense<0.000000e+00> : vector<8x16xf32>
    %114 = tpu.matmul %111, %113, %cst_52 {dimension_numbers = #tpu.dot_dimension_numbers<[1], [0], [0], [1], [0, 0, 1, 1], [], []>} : vector<8x64xbf16>, vector<64x16xbf16>, vector<8x16xf32> -> vector<8x16xf32>
    %c7_53 = arith.constant 7 : index
    %c0_54 = arith.constant 0 : index
    %115 = vector.load %arg2[%c7_53, %c0_54] : memref<19x64xf32, #tpu.memory_space<vmem>>, vector<1x16xf32>
    %116 = vector.shape_cast %115 : vector<1x16xf32> to vector<16xf32>
    %117 = vector.shape_cast %116 : vector<16xf32> to vector<1x16xf32>
    %118 = vector.broadcast %117 : vector<1x16xf32> to vector<8x16xf32>
    %119 = arith.addf %114, %118 : vector<8x16xf32>
    %120 = vector.extract_strided_slice %119 {offsets = [0, 0], sizes = [8, 8], strides = [1, 1]} : vector<8x16xf32> to vector<8x8xf32>
    %121 = math.tanh %120 : vector<8x8xf32>
    %122 = vector.extract_strided_slice %119 {offsets = [0, 8], sizes = [8, 8], strides = [1, 1]} : vector<8x16xf32> to vector<8x8xf32>
    %123 = math.exp %121 : vector<8x8xf32>
    %124 = arith.mulf %10, %123 : vector<8x8xf32>
    %125 = arith.addf %124, %122 : vector<8x8xf32>
    %126 = arith.addf %74, %121 : vector<8x8xf32>
    %127 = arith.truncf %73 : vector<8x8xf32> to vector<8x8xbf16>
    %c16 = arith.constant 16 : index
    %c0_55 = arith.constant 0 : index
    %c0_56 = arith.constant 0 : index
    %128 = vector.load %arg1[%c16, %c0_55, %c0_56] : memref<20x64x64xbf16, #tpu.memory_space<vmem>>, vector<1x8x16xbf16>
    %129 = vector.shape_cast %128 : vector<1x8x16xbf16> to vector<8x16xbf16>
    %cst_57 = arith.constant dense<0.000000e+00> : vector<8x16xf32>
    %130 = tpu.matmul %127, %129, %cst_57 {dimension_numbers = #tpu.dot_dimension_numbers<[1], [0], [0], [1], [0, 0, 1, 1], [], []>} : vector<8x8xbf16>, vector<8x16xbf16>, vector<8x16xf32> -> vector<8x16xf32>
    %131 = arith.truncf %125 : vector<8x8xf32> to vector<8x8xbf16>
    %c17_58 = arith.constant 17 : index
    %c0_59 = arith.constant 0 : index
    %c0_60 = arith.constant 0 : index
    %132 = vector.load %arg1[%c17_58, %c0_59, %c0_60] : memref<20x64x64xbf16, #tpu.memory_space<vmem>>, vector<1x8x16xbf16>
    %133 = vector.shape_cast %132 : vector<1x8x16xbf16> to vector<8x16xbf16>
    %cst_61 = arith.constant dense<0.000000e+00> : vector<8x16xf32>
    %134 = tpu.matmul %131, %133, %cst_61 {dimension_numbers = #tpu.dot_dimension_numbers<[1], [0], [0], [1], [0, 0, 1, 1], [], []>} : vector<8x8xbf16>, vector<8x16xbf16>, vector<8x16xf32> -> vector<8x16xf32>
    %135 = arith.addf %130, %134 : vector<8x16xf32>
    %c16_62 = arith.constant 16 : index
    %c0_63 = arith.constant 0 : index
    %136 = vector.load %arg2[%c16_62, %c0_63] : memref<19x64xf32, #tpu.memory_space<vmem>>, vector<1x16xf32>
    %137 = vector.shape_cast %136 : vector<1x16xf32> to vector<16xf32>
    %138 = vector.shape_cast %137 : vector<16xf32> to vector<1x16xf32>
    %139 = vector.broadcast %138 : vector<1x16xf32> to vector<8x16xf32>
    %140 = arith.addf %135, %139 : vector<8x16xf32>
    %141 = vector.extract_strided_slice %140 {offsets = [0, 0], sizes = [8, 8], strides = [1, 1]} : vector<8x16xf32> to vector<8x8xf32>
    %142 = vector.extract_strided_slice %140 {offsets = [0, 8], sizes = [8, 8], strides = [1, 1]} : vector<8x16xf32> to vector<8x8xf32>
    %143 = arith.truncf %141 : vector<8x8xf32> to vector<8x8xbf16>
    %c8_64 = arith.constant 8 : index
    %c0_65 = arith.constant 0 : index
    %c0_66 = arith.constant 0 : index
    %144 = vector.load %arg1[%c8_64, %c0_65, %c0_66] : memref<20x64x64xbf16, #tpu.memory_space<vmem>>, vector<1x8x64xbf16>
    %145 = vector.shape_cast %144 : vector<1x8x64xbf16> to vector<8x64xbf16>
    %cst_67 = arith.constant dense<0.000000e+00> : vector<8x64xf32>
    %146 = tpu.matmul %143, %145, %cst_67 {dimension_numbers = #tpu.dot_dimension_numbers<[1], [0], [0], [1], [0, 0, 1, 1], [], []>} : vector<8x8xbf16>, vector<8x64xbf16>, vector<8x64xf32> -> vector<8x64xf32>
    %c8_68 = arith.constant 8 : index
    %c0_69 = arith.constant 0 : index
    %147 = vector.load %arg2[%c8_68, %c0_69] : memref<19x64xf32, #tpu.memory_space<vmem>>, vector<1x64xf32>
    %148 = vector.shape_cast %147 : vector<1x64xf32> to vector<64xf32>
    %149 = vector.shape_cast %148 : vector<64xf32> to vector<1x64xf32>
    %150 = vector.broadcast %149 : vector<1x64xf32> to vector<8x64xf32>
    %151 = arith.addf %146, %150 : vector<8x64xf32>
    %cst_70 = arith.constant 0.00999999977 : f32
    %152 = vector.broadcast %cst_70 : f32 to vector<8x64xf32>
    %153 = arith.mulf %152, %151 : vector<8x64xf32>
    %154 = arith.maximumf %151, %153 : vector<8x64xf32>
    %155 = arith.truncf %154 : vector<8x64xf32> to vector<8x64xbf16>
    %c9 = arith.constant 9 : index
    %c0_71 = arith.constant 0 : index
    %c0_72 = arith.constant 0 : index
    %156 = vector.load %arg1[%c9, %c0_71, %c0_72] : memref<20x64x64xbf16, #tpu.memory_space<vmem>>, vector<1x64x64xbf16>
    %157 = vector.shape_cast %156 : vector<1x64x64xbf16> to vector<64x64xbf16>
    %cst_73 = arith.constant dense<0.000000e+00> : vector<8x64xf32>
    %158 = tpu.matmul %155, %157, %cst_73 {dimension_numbers = #tpu.dot_dimension_numbers<[1], [0], [0], [1], [0, 0, 1, 1], [], []>} : vector<8x64xbf16>, vector<64x64xbf16>, vector<8x64xf32> -> vector<8x64xf32>
    %c9_74 = arith.constant 9 : index
    %c0_75 = arith.constant 0 : index
    %159 = vector.load %arg2[%c9_74, %c0_75] : memref<19x64xf32, #tpu.memory_space<vmem>>, vector<1x64xf32>
    %160 = vector.shape_cast %159 : vector<1x64xf32> to vector<64xf32>
    %161 = vector.shape_cast %160 : vector<64xf32> to vector<1x64xf32>
    %162 = vector.broadcast %161 : vector<1x64xf32> to vector<8x64xf32>
    %163 = arith.addf %158, %162 : vector<8x64xf32>
    %cst_76 = arith.constant 0.00999999977 : f32
    %164 = vector.broadcast %cst_76 : f32 to vector<8x64xf32>
    %165 = arith.mulf %164, %163 : vector<8x64xf32>
    %166 = arith.maximumf %163, %165 : vector<8x64xf32>
    %167 = arith.truncf %166 : vector<8x64xf32> to vector<8x64xbf16>
    %c10 = arith.constant 10 : index
    %c0_77 = arith.constant 0 : index
    %c0_78 = arith.constant 0 : index
    %168 = vector.load %arg1[%c10, %c0_77, %c0_78] : memref<20x64x64xbf16, #tpu.memory_space<vmem>>, vector<1x64x64xbf16>
    %169 = vector.shape_cast %168 : vector<1x64x64xbf16> to vector<64x64xbf16>
    %cst_79 = arith.constant dense<0.000000e+00> : vector<8x64xf32>
    %170 = tpu.matmul %167, %169, %cst_79 {dimension_numbers = #tpu.dot_dimension_numbers<[1], [0], [0], [1], [0, 0, 1, 1], [], []>} : vector<8x64xbf16>, vector<64x64xbf16>, vector<8x64xf32> -> vector<8x64xf32>
    %c10_80 = arith.constant 10 : index
    %c0_81 = arith.constant 0 : index
    %171 = vector.load %arg2[%c10_80, %c0_81] : memref<19x64xf32, #tpu.memory_space<vmem>>, vector<1x64xf32>
    %172 = vector.shape_cast %171 : vector<1x64xf32> to vector<64xf32>
    %173 = vector.shape_cast %172 : vector<64xf32> to vector<1x64xf32>
    %174 = vector.broadcast %173 : vector<1x64xf32> to vector<8x64xf32>
    %175 = arith.addf %170, %174 : vector<8x64xf32>
    %cst_82 = arith.constant 0.00999999977 : f32
    %176 = vector.broadcast %cst_82 : f32 to vector<8x64xf32>
    %177 = arith.mulf %176, %175 : vector<8x64xf32>
    %178 = arith.maximumf %175, %177 : vector<8x64xf32>
    %179 = arith.truncf %178 : vector<8x64xf32> to vector<8x64xbf16>
    %c11 = arith.constant 11 : index
    %c0_83 = arith.constant 0 : index
    %c0_84 = arith.constant 0 : index
    %180 = vector.load %arg1[%c11, %c0_83, %c0_84] : memref<20x64x64xbf16, #tpu.memory_space<vmem>>, vector<1x64x16xbf16>
    %181 = vector.shape_cast %180 : vector<1x64x16xbf16> to vector<64x16xbf16>
    %cst_85 = arith.constant dense<0.000000e+00> : vector<8x16xf32>
    %182 = tpu.matmul %179, %181, %cst_85 {dimension_numbers = #tpu.dot_dimension_numbers<[1], [0], [0], [1], [0, 0, 1, 1], [], []>} : vector<8x64xbf16>, vector<64x16xbf16>, vector<8x16xf32> -> vector<8x16xf32>
    %c11_86 = arith.constant 11 : index
    %c0_87 = arith.constant 0 : index
    %183 = vector.load %arg2[%c11_86, %c0_87] : memref<19x64xf32, #tpu.memory_space<vmem>>, vector<1x16xf32>
    %184 = vector.shape_cast %183 : vector<1x16xf32> to vector<16xf32>
    %185 = vector.shape_cast %184 : vector<16xf32> to vector<1x16xf32>
    %186 = vector.broadcast %185 : vector<1x16xf32> to vector<8x16xf32>
    %187 = arith.addf %182, %186 : vector<8x16xf32>
    %188 = vector.extract_strided_slice %187 {offsets = [0, 0], sizes = [8, 8], strides = [1, 1]} : vector<8x16xf32> to vector<8x8xf32>
    %189 = math.tanh %188 : vector<8x8xf32>
    %190 = vector.extract_strided_slice %187 {offsets = [0, 8], sizes = [8, 8], strides = [1, 1]} : vector<8x16xf32> to vector<8x8xf32>
    %191 = math.exp %189 : vector<8x8xf32>
    %192 = arith.mulf %142, %191 : vector<8x8xf32>
    %193 = arith.addf %192, %190 : vector<8x8xf32>
    %194 = arith.addf %126, %189 : vector<8x8xf32>
    %195 = arith.truncf %193 : vector<8x8xf32> to vector<8x8xbf16>
    %c12 = arith.constant 12 : index
    %c0_88 = arith.constant 0 : index
    %c0_89 = arith.constant 0 : index
    %196 = vector.load %arg1[%c12, %c0_88, %c0_89] : memref<20x64x64xbf16, #tpu.memory_space<vmem>>, vector<1x8x64xbf16>
    %197 = vector.shape_cast %196 : vector<1x8x64xbf16> to vector<8x64xbf16>
    %cst_90 = arith.constant dense<0.000000e+00> : vector<8x64xf32>
    %198 = tpu.matmul %195, %197, %cst_90 {dimension_numbers = #tpu.dot_dimension_numbers<[1], [0], [0], [1], [0, 0, 1, 1], [], []>} : vector<8x8xbf16>, vector<8x64xbf16>, vector<8x64xf32> -> vector<8x64xf32>
    %c12_91 = arith.constant 12 : index
    %c0_92 = arith.constant 0 : index
    %199 = vector.load %arg2[%c12_91, %c0_92] : memref<19x64xf32, #tpu.memory_space<vmem>>, vector<1x64xf32>
    %200 = vector.shape_cast %199 : vector<1x64xf32> to vector<64xf32>
    %201 = vector.shape_cast %200 : vector<64xf32> to vector<1x64xf32>
    %202 = vector.broadcast %201 : vector<1x64xf32> to vector<8x64xf32>
    %203 = arith.addf %198, %202 : vector<8x64xf32>
    %cst_93 = arith.constant 0.00999999977 : f32
    %204 = vector.broadcast %cst_93 : f32 to vector<8x64xf32>
    %205 = arith.mulf %204, %203 : vector<8x64xf32>
    %206 = arith.maximumf %203, %205 : vector<8x64xf32>
    %207 = arith.truncf %206 : vector<8x64xf32> to vector<8x64xbf16>
    %c13 = arith.constant 13 : index
    %c0_94 = arith.constant 0 : index
    %c0_95 = arith.constant 0 : index
    %208 = vector.load %arg1[%c13, %c0_94, %c0_95] : memref<20x64x64xbf16, #tpu.memory_space<vmem>>, vector<1x64x64xbf16>
    %209 = vector.shape_cast %208 : vector<1x64x64xbf16> to vector<64x64xbf16>
    %cst_96 = arith.constant dense<0.000000e+00> : vector<8x64xf32>
    %210 = tpu.matmul %207, %209, %cst_96 {dimension_numbers = #tpu.dot_dimension_numbers<[1], [0], [0], [1], [0, 0, 1, 1], [], []>} : vector<8x64xbf16>, vector<64x64xbf16>, vector<8x64xf32> -> vector<8x64xf32>
    %c13_97 = arith.constant 13 : index
    %c0_98 = arith.constant 0 : index
    %211 = vector.load %arg2[%c13_97, %c0_98] : memref<19x64xf32, #tpu.memory_space<vmem>>, vector<1x64xf32>
    %212 = vector.shape_cast %211 : vector<1x64xf32> to vector<64xf32>
    %213 = vector.shape_cast %212 : vector<64xf32> to vector<1x64xf32>
    %214 = vector.broadcast %213 : vector<1x64xf32> to vector<8x64xf32>
    %215 = arith.addf %210, %214 : vector<8x64xf32>
    %cst_99 = arith.constant 0.00999999977 : f32
    %216 = vector.broadcast %cst_99 : f32 to vector<8x64xf32>
    %217 = arith.mulf %216, %215 : vector<8x64xf32>
    %218 = arith.maximumf %215, %217 : vector<8x64xf32>
    %219 = arith.truncf %218 : vector<8x64xf32> to vector<8x64xbf16>
    %c14 = arith.constant 14 : index
    %c0_100 = arith.constant 0 : index
    %c0_101 = arith.constant 0 : index
    %220 = vector.load %arg1[%c14, %c0_100, %c0_101] : memref<20x64x64xbf16, #tpu.memory_space<vmem>>, vector<1x64x64xbf16>
    %221 = vector.shape_cast %220 : vector<1x64x64xbf16> to vector<64x64xbf16>
    %cst_102 = arith.constant dense<0.000000e+00> : vector<8x64xf32>
    %222 = tpu.matmul %219, %221, %cst_102 {dimension_numbers = #tpu.dot_dimension_numbers<[1], [0], [0], [1], [0, 0, 1, 1], [], []>} : vector<8x64xbf16>, vector<64x64xbf16>, vector<8x64xf32> -> vector<8x64xf32>
    %c14_103 = arith.constant 14 : index
    %c0_104 = arith.constant 0 : index
    %223 = vector.load %arg2[%c14_103, %c0_104] : memref<19x64xf32, #tpu.memory_space<vmem>>, vector<1x64xf32>
    %224 = vector.shape_cast %223 : vector<1x64xf32> to vector<64xf32>
    %225 = vector.shape_cast %224 : vector<64xf32> to vector<1x64xf32>
    %226 = vector.broadcast %225 : vector<1x64xf32> to vector<8x64xf32>
    %227 = arith.addf %222, %226 : vector<8x64xf32>
    %cst_105 = arith.constant 0.00999999977 : f32
    %228 = vector.broadcast %cst_105 : f32 to vector<8x64xf32>
    %229 = arith.mulf %228, %227 : vector<8x64xf32>
    %230 = arith.maximumf %227, %229 : vector<8x64xf32>
    %231 = arith.truncf %230 : vector<8x64xf32> to vector<8x64xbf16>
    %c15 = arith.constant 15 : index
    %c0_106 = arith.constant 0 : index
    %c0_107 = arith.constant 0 : index
    %232 = vector.load %arg1[%c15, %c0_106, %c0_107] : memref<20x64x64xbf16, #tpu.memory_space<vmem>>, vector<1x64x16xbf16>
    %233 = vector.shape_cast %232 : vector<1x64x16xbf16> to vector<64x16xbf16>
    %cst_108 = arith.constant dense<0.000000e+00> : vector<8x16xf32>
    %234 = tpu.matmul %231, %233, %cst_108 {dimension_numbers = #tpu.dot_dimension_numbers<[1], [0], [0], [1], [0, 0, 1, 1], [], []>} : vector<8x64xbf16>, vector<64x16xbf16>, vector<8x16xf32> -> vector<8x16xf32>
    %c15_109 = arith.constant 15 : index
    %c0_110 = arith.constant 0 : index
    %235 = vector.load %arg2[%c15_109, %c0_110] : memref<19x64xf32, #tpu.memory_space<vmem>>, vector<1x16xf32>
    %236 = vector.shape_cast %235 : vector<1x16xf32> to vector<16xf32>
    %237 = vector.shape_cast %236 : vector<16xf32> to vector<1x16xf32>
    %238 = vector.broadcast %237 : vector<1x16xf32> to vector<8x16xf32>
    %239 = arith.addf %234, %238 : vector<8x16xf32>
    %240 = vector.extract_strided_slice %239 {offsets = [0, 0], sizes = [8, 8], strides = [1, 1]} : vector<8x16xf32> to vector<8x8xf32>
    %241 = math.tanh %240 : vector<8x8xf32>
    %242 = vector.extract_strided_slice %239 {offsets = [0, 8], sizes = [8, 8], strides = [1, 1]} : vector<8x16xf32> to vector<8x8xf32>
    %243 = math.exp %241 : vector<8x8xf32>
    %244 = arith.mulf %141, %243 : vector<8x8xf32>
    %245 = arith.addf %244, %242 : vector<8x8xf32>
    %246 = arith.addf %194, %241 : vector<8x8xf32>
    %247 = arith.truncf %193 : vector<8x8xf32> to vector<8x8xbf16>
    %c18_111 = arith.constant 18 : index
    %c0_112 = arith.constant 0 : index
    %c0_113 = arith.constant 0 : index
    %248 = vector.load %arg1[%c18_111, %c0_112, %c0_113] : memref<20x64x64xbf16, #tpu.memory_space<vmem>>, vector<1x8x16xbf16>
    %249 = vector.shape_cast %248 : vector<1x8x16xbf16> to vector<8x16xbf16>
    %cst_114 = arith.constant dense<0.000000e+00> : vector<8x16xf32>
    %250 = tpu.matmul %247, %249, %cst_114 {dimension_numbers = #tpu.dot_dimension_numbers<[1], [0], [0], [1], [0, 0, 1, 1], [], []>} : vector<8x8xbf16>, vector<8x16xbf16>, vector<8x16xf32> -> vector<8x16xf32>
    %251 = arith.truncf %245 : vector<8x8xf32> to vector<8x8xbf16>
    %c19 = arith.constant 19 : index
    %c0_115 = arith.constant 0 : index
    %c0_116 = arith.constant 0 : index
    %252 = vector.load %arg1[%c19, %c0_115, %c0_116] : memref<20x64x64xbf16, #tpu.memory_space<vmem>>, vector<1x8x16xbf16>
    %253 = vector.shape_cast %252 : vector<1x8x16xbf16> to vector<8x16xbf16>
    %cst_117 = arith.constant dense<0.000000e+00> : vector<8x16xf32>
    %254 = tpu.matmul %251, %253, %cst_117 {dimension_numbers = #tpu.dot_dimension_numbers<[1], [0], [0], [1], [0, 0, 1, 1], [], []>} : vector<8x8xbf16>, vector<8x16xbf16>, vector<8x16xf32> -> vector<8x16xf32>
    %255 = arith.addf %250, %254 : vector<8x16xf32>
    %c0_118 = arith.constant 0 : index
    %c0_119 = arith.constant 0 : index
    %256 = vector.load %arg4[%c0_118, %c0_119] : memref<8x16xf32, #tpu.memory_space<vmem>>, vector<8x16xf32>
    tpu.vector_store %arg4[%c0_118, %c0_119], %255 {strides = array<i32>} : memref<8x16xf32, #tpu.memory_space<vmem>>, vector<8x16xf32>,
    %cst_120 = arith.constant dense<0.000000e+00> : vector<8xf32>
    %257 = vector.multi_reduction <add>, %246, %cst_120 [1] : vector<8x8xf32> to vector<8xf32>
    %258 = vector.shape_cast %257 : vector<8xf32> to vector<8x1xf32>
    %c0_121 = arith.constant 0 : index
    %259 = memref.load %arg3[%c0_121] : memref<1xf32, #tpu.memory_space<smem>>
    %260 = vector.broadcast %259 : f32 to vector<8x1xf32>
    %261 = arith.addf %258, %260 : vector<8x1xf32>
    %c0_122 = arith.constant 0 : index
    %c0_123 = arith.constant 0 : index
    %262 = vector.load %arg5[%c0_122, %c0_123] : memref<8x1xf32, #tpu.memory_space<vmem>>, vector<8x1xf32>
    tpu.vector_store %arg5[%c0_122, %c0_123], %261 {strides = array<i32>} : memref<8x1xf32, #tpu.memory_space<vmem>>, vector<8x1xf32>,
    return
  }
}

</mosaic_0001>

<bundles_post_ra>
// kernel: flow_forward.1
= control target key start
LH: loop header
LB: loop body
LE: loop exit
PB: predicated region body
PF: predicated region fallthrough
CT: control target
= control target key end

     0   :  { %12 = vsyncpa [#allocation4], 0  ;;  %s2308_s0 = inlined_call_operand.hbm [shape: f32[8,16], index: 0, kind: input, shape index: {}]   ;;  %s2309_s1 = inlined_call_operand.hbm [shape: bf16[20,64,64], index: 1, kind: input, shape index: {}]   ;;  %s2310_s2 = inlined_call_operand.hbm [shape: f32[19,64], index: 2, kind: input, shape index: {}]   ;;  %s2311_s3 = inlined_call_operand.<no memory space> [shape: f32[1], index: 3, kind: input, shape index: {}]   ;;  %s2312_s4 = inlined_call_operand.hbm [shape: f32[8,16], index: 4, kind: output, shape index: {0}]   ;;  %s2313_s5 = inlined_call_operand.vmem [shape: f32[8,1], index: 5, kind: output, shape index: {1}]  }
   0x1   :  { %13 = vsyncpa [#allocation7], 0 }
   0x2   :  { %14 = vsyncpa [#allocation5], 0  ;;  %s2086_s18 = smov [#allocation6]  }
   0x3   :  { %s30_s19 = sshll.u32 %s2086_s18, 4  ;;  %s31_s19 = int_to_ptr.vmem [resolvable:$true] %s30_s19 }
   0x4   :  { %s2008_s20 = scalar_lea.vmem %s31_s19, 10240  ;;  %p2013_p1 = scmp.lt.s32.totalorder %s31_s19, %s31_s19 }
   0x5   :  { %p2009_p0 = scmp.ne.s32.totalorder %s31_s19, %s2008_s20  ;;  %p2014_p2 = scmp.lt.s32.totalorder %s2008_s20, %s2008_s20 }
   0x7   :  { %p2015_p3 = por %p2014_p2, %p2013_p1 }
   0x9   :  { %p2016_p4 = pnand %p2015_p3, %p2009_p0 }
   0xb   :  { %2019 = shalt.err (!%p2016_p4)
}
   0xc   :  { %s2087_s21 = smov 64   ;;  %s2088_s22 = smov 4  }
   0xd   :  { %36 = dma.hbm_to_vmem [thread:$0]  %s2309_s1, 10240, %s31_s19, [#allocation7], %s2087_s21, %s2087_s21, %s2088_s22  }
   0xe   :  { %s2089_s25 = smov [#allocation3]   ;;  %s2090_s27 = smov [#allocation8]  }
   0xf   :  { %s21_s26 = sshll.u32 %s2089_s25, 4  ;;  %s42_s28 = sshll.u32 %s2090_s27, 4  ;;  %s22_s26 = int_to_ptr.vmem [resolvable:$true] %s21_s26  ;;  %s43_s28 = int_to_ptr.vmem [resolvable:$true] %s42_s28 }
  0x10   :  { %s2028_s29 = scalar_lea.vmem %s22_s26, 128  ;;  %p2033_p6 = scmp.lt.s32.totalorder %s22_s26, %s22_s26 }
  0x11   :  { %p2029_p5 = scmp.ne.s32.totalorder %s22_s26, %s2028_s29  ;;  %p2034_p7 = scmp.lt.s32.totalorder %s2028_s29, %s2028_s29 }
  0x13   :  { %p2035_p8 = por %p2034_p7, %p2033_p6 }
  0x15   :  { %p2036_p9 = pnand %p2035_p8, %p2029_p5 }
  0x17   :  { %2039 = shalt.err (!%p2036_p9)
}
  0x18   :  { %24 = dma.hbm_to_vmem [thread:$0]  %s2308_s0, 128, %s22_s26, [#allocation4]  }
  0x19   :  { %s2048_s7 = scalar_lea.vmem %s43_s28, 384  ;;  %p2053_p11 = scmp.lt.s32.totalorder %s43_s28, %s43_s28 }
  0x1a   :  { %p2049_p10 = scmp.ne.s32.totalorder %s43_s28, %s2048_s7  ;;  %p2054_p12 = scmp.lt.s32.totalorder %s2048_s7, %s2048_s7 }
  0x1c   :  { %p2055_p13 = por %p2054_p12, %p2053_p11 }
  0x1e   :  { %p2056_p0 = pnand %p2055_p13, %p2049_p10 }
  0x20   :  { %2059 = shalt.err (!%p2056_p0)
}
  0x21   :  { %s2091_s1 = smov 128   ;;  %s2092_s8 = smov 8  }
  0x22   :  { %48 = dma.hbm_to_vmem [thread:$0]  %s2310_s2, 384, %s43_s28, [#allocation7], %s2091_s1, %s2091_s1, %s2092_s8  }
  0x23   :  { %2080 = dma.done.wait [#allocation4], 128  }
  0x24   :  { %2081 = vsyncadd [#allocation4], 4294967168 }
  0x25   :  { %2082 = dma.done.wait [#allocation7], 10624  }
  0x26   :  { %2083 = vsyncadd [#allocation7], 4294956672  ;;  %v2093_v0 = vmov 0.0   ;;  %vm2094_vm0 = vmmov 0   ;;  %vm85_vm1 = vcmask 1043456   ;;  %v61_v2 = vld [vmem:[#allocation3] sm:$0xff] }
  0x27   :  { %1733 = vmatprep.subr.bf16.mxu0 %v2093_v0  ;;  %1735 = vmatprep.mubr.msk.bf16.mxu0 %vm2094_vm0, %v2093_v0  ;;  %v75_v1 = vld [vmem:[#allocation6] sm:$0xf]  ;;  %v1570_v3 = vld [vmem:[#allocation8 + $0x11] ss:$0 sm:$0xff]  ;;  %v1571_v6 = vld [vmem:[#allocation8 + $0x12] ss:$0 sm:$0xff] }
  0x28   :  { %1739 = vmatprep.subr.bf16.mxu1 %v2093_v0  ;;  %1747 = vmatprep.mubr.msk.bf16.mxu1 %vm2094_vm0, %v2093_v0  ;;  %v87_v4 = vsel %vm85_vm1, %v75_v1, 0  ;;  %v67_v5 = vmul.f32 %v1570_v3, %v61_v2  ;;  %v1936_v7 = vld [vmem:[#allocation6 + $0x38] sm:$0xff]   ;;  %vm81_vm2 = vcmask 64512   ;;  %v1937_v9 = vld [vmem:[#allocation6 + $0x30] sm:$0xff]   ;;  %v1938_v11 = vld [vmem:[#allocation6 + $0x28] sm:$0xff]   ;;  %vm170_vm3 = vcmask 523264  }
  0x29   :  { %1734 = vmatpush3.bf16.msra.mxu0 %v87_v4  ;;  %1740 = vmatpush3.bf16.msra.mxu1 %v1936_v7  ;;  %v1939_v12 = vld [vmem:[#allocation6 + $0x20] sm:$0xff]   ;;  %v1940_v13 = vld [vmem:[#allocation6 + $0x58] sm:$0xff]   ;;  %v1941_v14 = vld [vmem:[#allocation6 + $0x50] sm:$0xff]   ;;  %s2095_s0 = smov 120   ;;  %vm1548_vm4 = vcmask 7168   ;;  %s2096_s14 = smov [#allocation9]  }
  0x2a   :  { %v2144_v8 = vadd.f32 %v1571_v6, %v67_v5  ;;  %1751 = vmatprep.subr.bf16.mxu0 %v2093_v0  ;;  %1741 = vmatprep.subr.bf16.mxu1 %v2093_v0  ;;  %v1572_v15 = vld [vmem:[#allocation8] ss:$0 sm:$0xff]  ;;  %v1942_v24 = vld [vmem:[#allocation6 + $0x48] sm:$0xff]   ;;  %v1944_v26 = vld [vmem:[#allocation6 + $0x78] sm:$0xff]   ;;  %s1556_s15 = sshll.u32 %s2096_s14, 4  ;;  %vm1540_vm5 = vcmask 130048   ;;  %s1557_s15 = int_to_ptr.vmem [resolvable:$true] %s1556_s15 }
  0x2b   :  { %v1943_v25 = vld [vmem:[#allocation6 + $0x40] sm:$0xff]   ;;  %v1945_v27 = vld [vmem:[#allocation6 + $0x70] sm:$0xff]   ;;  %v1946_v37 = vld [vmem:[#allocation6 + $0x68] sm:$0xff]   ;;  %p2065_p2 = scmp.lt.s32.totalorder %s1557_s15, %s1557_s15 }
  0x2c   :  { %v74_v10 = vpack.c.bf16 %v2144_v8, %v2144_v8  ;;  %v1574_v28 = vld [vmem:[#allocation8 + $0x1] ss:$0 sm:$0xff]  ;;  %v1580_v39 = vld [vmem:[#allocation8 + $0x2] ss:$0 sm:$0xff]  ;;  %v1586_v48 = vld [vmem:[#allocation8 + $0x3] ss:$0 sm:$0xff] }
  0x2d   :  { %1742 = vmatpush3.bf16.msra.mxu1 %v1937_v9  ;;  %v1947_v38 = vld [vmem:[#allocation6 + $0x60] sm:$0xff]   ;;  %v1948_v63 = vld [vmem:[#allocation6 + $0xb8] sm:$0xff]   ;;  %v1949_v2 = vld [vmem:[#allocation6 + $0xb0] sm:$0xff]  }
  0x2e   :  { %1736 = vmatmul.mubr.msk.bf16.vlgmr.msra.gmra.mxu0 %vm81_vm2, %v74_v10  ;;  %1743 = vmatprep.subr.bf16.mxu1 %v2093_v0  ;;  %v394_v56 = vld [vmem:[#allocation6 + $0x80] sm:$0xf]  ;;  %v1950_v3 = vld [vmem:[#allocation6 + $0xa8] sm:$0xff]   ;;  %v1952_v5 = vld [vmem:[#allocation6 + $0xd8] sm:$0xff]  }
  0x2f   :  { %1759 = vmatprep.mubr.msk.bf16.mxu0 %vm2094_vm0, %v2093_v0  ;;  %1752 = vmatpush3.bf16.msra.mxu0 %v1940_v13  ;;  %v407_v57 = vsel %vm85_vm1, %v394_v56, 0  ;;  %v1951_v4 = vld [vmem:[#allocation6 + $0xa0] sm:$0xff]   ;;  %v1953_v6 = vld [vmem:[#allocation6 + $0xd0] sm:$0xff]  }
  0x30   :  { %1753 = vmatprep.subr.bf16.mxu0 %v2093_v0  ;;  %v1592_v7 = vld [vmem:[#allocation8 + $0x4] ss:$0 sm:$0xff] }
  0x31   :  { %1744 = vmatpush3.bf16.msra.mxu1 %v1938_v11 }
  0x32   :  { %1745 = vmatprep.subr.bf16.mxu1 %v2093_v0 }
  0x33   :  { %1754 = vmatpush3.bf16.msra.mxu0 %v1941_v14 }
  0x34   :  { %1755 = vmatprep.subr.bf16.mxu0 %v2093_v0 }
  0x35   :  { %1746 = vmatpush3.bf16.msra.mxu1 %v1939_v12 }
  0x36   :  { %1763 = vmatprep.subr.bf16.mxu1 %v2093_v0 }
  0x37   :  { %1756 = vmatpush3.bf16.msra.mxu0 %v1942_v24 }
  0x38   :  { %1757 = vmatprep.subr.bf16.mxu0 %v2093_v0 }
  0x3b   :  { %1758 = vmatpush3.bf16.msra.mxu0 %v1943_v25 }
  0x3c   :  { %1775 = vmatprep.subr.bf16.mxu0 %v2093_v0 }
  0xee   :  { %v123_v16 = vpop.f32.mrf.mxu0 }
  0xef   :  { %v124_v17 = vadd.f32 %v1572_v15, %v123_v16 }
  0xf0   :  { %v1737_v18 = vpop.f32.mrf.mxu0 }
  0xf1   :  { %v129_v19 = vmul.f32 0.01, %v124_v17  ;;  %v1955_v18 = vld [vmem:[#allocation6 + $0xc0] sm:$0xff]  }
  0xf2   :  { %v126_v20 = vpop.f32.mrf.mxu0 }
  0xf3   :  { %v130_v21 = vmax.f32 %v124_v17, %v129_v19  ;;  %v1954_v17 = vld [vmem:[#allocation6 + $0xc8] sm:$0xff]   ;;  %v1956_v19 = vld [vmem:[#allocation6 + $0xf8] sm:$0xff]   ;;  %v1957_v20 = vld [vmem:[#allocation6 + $0xf0] sm:$0xff]  }
  0xf4   :  { %v1738_v22 = vpop.f32.mrf.mxu0 }
  0xf5   :  { %v131_v23 = vpack.c.bf16 %v130_v21, %v130_v21  ;;  %v1594_v21 = vld [vmem:[#allocation8 + $0x5] ss:$0 sm:$0xff] }
  0xf7   :  { %1748 = vmatmul.mubr.msk.bf16.vlgmr.msra.gmra.mxu1 %vm170_vm3, %v131_v23 }
  0xf8   :  { %1771 = vmatprep.mubr.msk.bf16.mxu1 %vm2094_vm0, %v2093_v0  ;;  %1764 = vmatpush3.bf16.msra.mxu1 %v1944_v26 }
  0xf9   :  { %1765 = vmatprep.subr.bf16.mxu1 %v2093_v0 }
  0xfc   :  { %1766 = vmatpush3.bf16.msra.mxu1 %v1945_v27 }
  0xfd   :  { %1767 = vmatprep.subr.bf16.mxu1 %v2093_v0 }
 0x100   :  { %1768 = vmatpush3.bf16.msra.mxu1 %v1946_v37 }
 0x101   :  { %1769 = vmatprep.subr.bf16.mxu1 %v2093_v0 }
 0x104   :  { %1770 = vmatpush3.bf16.msra.mxu1 %v1947_v38 }
 0x105   :  { %1793 = vmatprep.subr.bf16.mxu1 %v2093_v0 }
 0x1b7   :  { %v208_v29 = vpop.f32.mrf.mxu1 }
 0x1b8   :  { %v209_v30 = vadd.f32 %v1574_v28, %v208_v29 }
 0x1b9   :  { %v1749_v31 = vpop.f32.mrf.mxu1 }
 0x1ba   :  { %v214_v32 = vmul.f32 0.01, %v209_v30  ;;  %v1959_v31 = vld [vmem:[#allocation6 + $0xe0] sm:$0xff]  }
 0x1bb   :  { %v211_v33 = vpop.f32.mrf.mxu1 }
 0x1bc   :  { %v215_v34 = vmax.f32 %v209_v30, %v214_v32  ;;  %v1958_v30 = vld [vmem:[#allocation6 + $0xe8] sm:$0xff]   ;;  %v1600_v32 = vld [vmem:[#allocation8 + $0x6] ss:$0 sm:$0xff] }
 0x1bd   :  { %v1750_v35 = vpop.f32.mrf.mxu1 }
 0x1be   :  { %v216_v36 = vpack.c.bf16 %v215_v34, %v215_v34 }
 0x1c0   :  { %1760 = vmatmul.mubr.msk.bf16.vlgmr.msra.gmra.mxu0 %vm170_vm3, %v216_v36 }
 0x1c1   :  { %1777 = vmatprep.mubr.msk.bf16.mxu0 %vm2094_vm0, %v2093_v0  ;;  %1776 = vmatpush3.bf16.msra.mxu0 %v407_v57 }
 0x1c2   :  { %1781 = vmatprep.subr.bf16.mxu0 %v2093_v0 }
 0x280   :  { %v292_v40 = vpop.f32.mrf.mxu0 }
 0x281   :  { %v293_v41 = vadd.f32 %v1580_v39, %v292_v40 }
 0x282   :  { %v1761_v42 = vpop.f32.mrf.mxu0 }
 0x283   :  { %v298_v43 = vmul.f32 0.01, %v293_v41 }
 0x284   :  { %v295_v44 = vpop.f32.mrf.mxu0 }
 0x285   :  { %v299_v45 = vmax.f32 %v293_v41, %v298_v43  ;;  %v715_v41 = vld [vmem:[#allocation6 + $0x220] sm:$0xf]  ;;  %v1606_v43 = vld [vmem:[#allocation8 + $0x7] ss:$0 sm:$0xff] }
 0x286   :  { %v1762_v46 = vpop.f32.mrf.mxu0  ;;  %v720_v42 = vsel %vm85_vm1, %v715_v41, 0 }
 0x287   :  { %v300_v47 = vpack.c.bf16 %v299_v45, %v299_v45 }
 0x289   :  { %1772 = vmatmul.mubr.msk.bf16.vlgmr.msra.gmra.mxu1 %vm170_vm3, %v300_v47 }
 0x28a   :  { %1801 = vmatprep.mubr.msk.bf16.mxu1 %vm2094_vm0, %v2093_v0  ;;  %1794 = vmatpush3.bf16.msra.mxu1 %v1952_v5 }
 0x28b   :  { %1795 = vmatprep.subr.bf16.mxu1 %v2093_v0 }
 0x28e   :  { %1796 = vmatpush3.bf16.msra.mxu1 %v1953_v6 }
 0x28f   :  { %1797 = vmatprep.subr.bf16.mxu1 %v2093_v0 }
 0x292   :  { %1798 = vmatpush3.bf16.msra.mxu1 %v1954_v17 }
 0x293   :  { %1799 = vmatprep.subr.bf16.mxu1 %v2093_v0 }
 0x296   :  { %1800 = vmatpush3.bf16.msra.mxu1 %v1955_v18 }
 0x297   :  { %1817 = vmatprep.subr.bf16.mxu1 %v2093_v0 }
 0x349   :  { %v376_v49 = vpop.f32.mrf.mxu1 }
 0x34a   :  { %v377_v50 = vadd.f32 %v1586_v48, %v376_v49 }
 0x34b   :  { %v1773_v51 = vpop.f32.mrf.mxu1 }
 0x34c   :  { %1984 = vtanh.f32 %v377_v50 }
 0x34d   :  { %v379_v52 = vpop.f32.mrf.mxu1 }
 0x34f   :  { %v1774_v53 = vpop.f32.mrf.mxu1 }
 0x359   :  { %v2173_v54 = vpop.eup %1984 }
 0x35a   :  { %v383_v55 = vmul.f32 1.442695, %v2173_v54 }
 0x35c   :  { %1986 = vpow2.f32 %v383_v55  ;;  %v712_v55 = vld [vmem:[#allocation6 + $0x200] sm:$0xf] }
 0x369   :  { %v1987_v58 = vpop.eup %1986 }
 0x36a   :  { %386 = vrot.lane.b32.xlu0 %v1987_v58, %s2092_s8  ;;  %v763_v58 = vsel %vm85_vm1, %v712_v55, 0 }
 0x3dc   :  { %v387_v59 = vpop.permute.xlu0 %386 }
 0x3dd   :  { %v389_v60 = vmul.f32 %v387_v59, %v2144_v8 }
 0x3df   :  { %v390_v61 = vadd.f32 %v389_v60, %v377_v50  ;;  %v1960_v60 = vld [vmem:[#allocation6 + $0x138] sm:$0xff]  }
 0x3e1   :  { %v392_v62 = vpack.c.bf16 %v390_v61, %v390_v61  ;;  %v1961_v61 = vld [vmem:[#allocation6 + $0x130] sm:$0xff]  }
 0x3e3   :  { %401 = vrot.lane.b32.xlu0 %v392_v62, %s2095_s0 }
 0x455   :  { %v2181_v1 = vpop.permute.xlu0 %401 }
 0x456   :  { %1778 = vmatmul.mubr.msk.bf16.vlgmr.msra.gmra.mxu0 %vm81_vm2, %v2181_v1 }
 0x457   :  { %1782 = vmatpush3.bf16.msra.mxu0 %v1948_v63  ;;  %1789 = vmatprep.mubr.msk.bf16.mxu0 %vm2094_vm0, %v2093_v0 }
 0x458   :  { %1783 = vmatprep.subr.bf16.mxu0 %v2093_v0 }
 0x45b   :  { %1784 = vmatpush3.bf16.msra.mxu0 %v1949_v2 }
 0x45c   :  { %1785 = vmatprep.subr.bf16.mxu0 %v2093_v0 }
 0x45f   :  { %1786 = vmatpush3.bf16.msra.mxu0 %v1950_v3 }
 0x460   :  { %1787 = vmatprep.subr.bf16.mxu0 %v2093_v0 }
 0x463   :  { %1788 = vmatpush3.bf16.msra.mxu0 %v1951_v4  ;;  %v1614_v4 = vld [vmem:[#allocation8 + $0x10] ss:$0 sm:$0xff] }
 0x464   :  { %1805 = vmatprep.subr.bf16.mxu0 %v2093_v0 }
 0x516   :  { %v443_v9 = vpop.f32.mrf.mxu0 }
 0x517   :  { %v444_v10 = vadd.f32 %v1592_v7, %v443_v9 }
 0x518   :  { %v1779_v11 = vpop.f32.mrf.mxu0 }
 0x519   :  { %v449_v12 = vmul.f32 0.01, %v444_v10 }
 0x51a   :  { %v446_v13 = vpop.f32.mrf.mxu0 }
 0x51b   :  { %v450_v14 = vmax.f32 %v444_v10, %v449_v12  ;;  %v1962_v12 = vld [vmem:[#allocation6 + $0x128] sm:$0xff]   ;;  %v1963_v13 = vld [vmem:[#allocation6 + $0x120] sm:$0xff]  }
 0x51c   :  { %v1780_v15 = vpop.f32.mrf.mxu0 }
 0x51d   :  { %v451_v16 = vpack.c.bf16 %v450_v14, %v450_v14  ;;  %v1964_v14 = vld [vmem:[#allocation6 + $0x158] sm:$0xff]   ;;  %v1965_v15 = vld [vmem:[#allocation6 + $0x150] sm:$0xff]  }
 0x51f   :  { %1790 = vmatmul.mubr.msk.bf16.vlgmr.msra.gmra.mxu0 %vm170_vm3, %v451_v16  ;;  %v1615_v16 = vld [vmem:[#allocation8 + $0x8] ss:$0 sm:$0xff] }
 0x520   :  { %1813 = vmatprep.mubr.msk.bf16.mxu0 %vm2094_vm0, %v2093_v0  ;;  %1806 = vmatpush3.bf16.msra.mxu0 %v1956_v19 }
 0x521   :  { %1807 = vmatprep.subr.bf16.mxu0 %v2093_v0 }
 0x524   :  { %1808 = vmatpush3.bf16.msra.mxu0 %v1957_v20 }
 0x525   :  { %1809 = vmatprep.subr.bf16.mxu0 %v2093_v0 }
 0x528   :  { %1810 = vmatpush3.bf16.msra.mxu0 %v1958_v30 }
 0x529   :  { %1811 = vmatprep.subr.bf16.mxu0 %v2093_v0 }
 0x52c   :  { %1812 = vmatpush3.bf16.msra.mxu0 %v1959_v31 }
 0x52d   :  { %1829 = vmatprep.subr.bf16.mxu0 %v2093_v0 }
 0x5df   :  { %v527_v22 = vpop.f32.mrf.mxu0 }
 0x5e0   :  { %v528_v23 = vadd.f32 %v1594_v21, %v527_v22 }
 0x5e1   :  { %v1791_v24 = vpop.f32.mrf.mxu0 }
 0x5e2   :  { %v533_v25 = vmul.f32 0.01, %v528_v23 }
 0x5e3   :  { %v530_v26 = vpop.f32.mrf.mxu0 }
 0x5e4   :  { %v534_v27 = vmax.f32 %v528_v23, %v533_v25  ;;  %v1966_v25 = vld [vmem:[#allocation6 + $0x148] sm:$0xff]   ;;  %v1967_v26 = vld [vmem:[#allocation6 + $0x140] sm:$0xff]  }
 0x5e5   :  { %v1792_v28 = vpop.f32.mrf.mxu0 }
 0x5e6   :  { %v535_v29 = vpack.c.bf16 %v534_v27, %v534_v27  ;;  %v1968_v27 = vld [vmem:[#allocation6 + $0x178] sm:$0xff]   ;;  %v1969_v28 = vld [vmem:[#allocation6 + $0x170] sm:$0xff]  }
 0x5e8   :  { %1802 = vmatmul.mubr.msk.bf16.vlgmr.msra.gmra.mxu1 %vm170_vm3, %v535_v29  ;;  %v1617_v29 = vld [vmem:[#allocation8 + $0x9] ss:$0 sm:$0xff] }
 0x5e9   :  { %1819 = vmatprep.mubr.msk.bf16.mxu1 %vm2094_vm0, %v2093_v0  ;;  %1818 = vmatpush3.bf16.msra.mxu1 %v720_v42 }
 0x5ea   :  { %1823 = vmatprep.subr.bf16.mxu1 %v2093_v0 }
 0x6a8   :  { %v611_v33 = vpop.f32.mrf.mxu1 }
 0x6a9   :  { %v612_v34 = vadd.f32 %v1600_v32, %v611_v33 }
 0x6aa   :  { %v1803_v35 = vpop.f32.mrf.mxu1 }
 0x6ab   :  { %v617_v36 = vmul.f32 0.01, %v612_v34 }
 0x6ac   :  { %v614_v37 = vpop.f32.mrf.mxu1 }
 0x6ad   :  { %v618_v38 = vmax.f32 %v612_v34, %v617_v36 }
 0x6ae   :  { %v1804_v39 = vpop.f32.mrf.mxu1 }
 0x6af   :  { %v619_v40 = vpack.c.bf16 %v618_v38, %v618_v38  ;;  %v1970_v38 = vld [vmem:[#allocation6 + $0x168] sm:$0xff]   ;;  %v1971_v39 = vld [vmem:[#allocation6 + $0x160] sm:$0xff]  }
 0x6b1   :  { %1814 = vmatmul.mubr.msk.bf16.vlgmr.msra.gmra.mxu0 %vm170_vm3, %v619_v40  ;;  %v1623_v40 = vld [vmem:[#allocation8 + $0xa] ss:$0 sm:$0xff] }
 0x6b2   :  { %1831 = vmatprep.mubr.msk.bf16.mxu0 %vm2094_vm0, %v2093_v0 }
 0x771   :  { %v695_v44 = vpop.f32.mrf.mxu0 }
 0x772   :  { %v696_v45 = vadd.f32 %v1606_v43, %v695_v44 }
 0x773   :  { %v1815_v46 = vpop.f32.mrf.mxu0 }
 0x774   :  { %706 = vrot.lane.b32.xlu1 %v696_v45, %s2095_s0  ;;  %1988 = vtanh.f32 %v696_v45 }
 0x775   :  { %v698_v47 = vpop.f32.mrf.mxu0 }
 0x777   :  { %v1816_v48 = vpop.f32.mrf.mxu0 }
 0x781   :  { %v2211_v49 = vpop.eup %1988 }
 0x782   :  { %v702_v50 = vmul.f32 1.442695, %v2211_v49 }
 0x784   :  { %1990 = vpow2.f32 %v702_v50  ;;  %v1629_v50 = vld [vmem:[#allocation8 + $0xb] ss:$0 sm:$0xff] }
 0x791   :  { %v1991_v51 = vpop.eup %1990 }
 0x792   :  { %v704_v52 = vmul.f32 %v1991_v51, %v2144_v8  ;;  %v813_v8 = vld [vmem:[#allocation6 + $0x100] sm:$0xf] }
 0x793   :  { %v823_v59 = vsel %vm85_vm1, %v813_v8, 0 }
 0x794   :  { %1830 = vmatpush3.bf16.msra.mxu0 %v823_v59 }
 0x795   :  { %1847 = vmatprep.subr.bf16.mxu0 %v2093_v0 }
 0x7e6   :  { %v707_v53 = vpop.permute.xlu1 %706 }
 0x7e7   :  { %v709_v56 = vadd.f32 %v707_v53, %v704_v52 }
 0x7e9   :  { %v713_v57 = vpack.c.bf16 %v709_v56, %v709_v56 }
 0x7eb   :  { %1820 = vmatmul.mubr.msk.bf16.vlgmr.msra.gmra.mxu1 %vm81_vm2, %v713_v57  ;;  %v710_v57 = vadd.f32 %v2211_v49, %v2173_v54  ;;  %v1972_v54 = vld [vmem:[#allocation6 + $0x1b8] sm:$0xff]  }
 0x7ec   :  { %1824 = vmatpush3.bf16.msra.mxu1 %v763_v58  ;;  %1825 = vmatprep.mubr.msk.bf16.mxu1 %vm2094_vm0, %v2093_v0 }
 0x7ed   :  { %1835 = vmatprep.subr.bf16.mxu1 %v2093_v0 }
 0x7f3   :  { %1826 = vmatmul.mubr.msk.bf16.vlgmr.msra.gmra.mxu1 %vm81_vm2, %v2181_v1 }
 0x7f4   :  { %1843 = vmatprep.mubr.msk.bf16.mxu1 %vm2094_vm0, %v2093_v0  ;;  %1836 = vmatpush3.bf16.msra.mxu1 %v1960_v60  ;;  %v1129_v60 = vld [vmem:[#allocation6 + $0x180] sm:$0xf] }
 0x7f5   :  { %1837 = vmatprep.subr.bf16.mxu1 %v2093_v0 }
 0x7f8   :  { %1838 = vmatpush3.bf16.msra.mxu1 %v1961_v61  ;;  %v1142_v61 = vsel %vm85_vm1, %v1129_v60, 0 }
 0x7f9   :  { %1839 = vmatprep.subr.bf16.mxu1 %v2093_v0 }
 0x7fc   :  { %1840 = vmatpush3.bf16.msra.mxu1 %v1962_v12 }
 0x7fd   :  { %1841 = vmatprep.subr.bf16.mxu1 %v2093_v0 }
 0x800   :  { %1842 = vmatpush3.bf16.msra.mxu1 %v1963_v13 }
 0x801   :  { %1859 = vmatprep.subr.bf16.mxu1 %v2093_v0 }
 0x8ab   :  { %v756_v62 = vpop.f32.mrf.mxu1 }
 0x8ad   :  { %v1821_v63 = vpop.f32.mrf.mxu1 }
 0x8af   :  { %v759_v1 = vpop.f32.mrf.mxu1 }
 0x8b1   :  { %v1822_v2 = vpop.f32.mrf.mxu1 }
 0x8b3   :  { %v799_v3 = vpop.f32.mrf.mxu1 }
 0x8b4   :  { %v800_v5 = vadd.f32 %v799_v3, %v756_v62 }
 0x8b5   :  { %v1827_v6 = vpop.f32.mrf.mxu1 }
 0x8b6   :  { %v2228_v7 = vadd.f32 %v1614_v4, %v800_v5  ;;  %v1973_v4 = vld [vmem:[#allocation6 + $0x1b0] sm:$0xff]   ;;  %v1974_v5 = vld [vmem:[#allocation6 + $0x1a8] sm:$0xff]   ;;  %v1975_v6 = vld [vmem:[#allocation6 + $0x1a0] sm:$0xff]  }
 0x8b7   :  { %v802_v9 = vpop.f32.mrf.mxu1 }
 0x8b8   :  { %v811_v10 = vpack.c.bf16 %v2228_v7, %v2228_v7  ;;  %v1976_v9 = vld [vmem:[#allocation6 + $0x1d8] sm:$0xff]  }
 0x8b9   :  { %v1828_v11 = vpop.f32.mrf.mxu1 }
 0x8ba   :  { %1832 = vmatmul.mubr.msk.bf16.vlgmr.msra.gmra.mxu0 %vm81_vm2, %v811_v10  ;;  %v1977_v10 = vld [vmem:[#allocation6 + $0x1d0] sm:$0xff]   ;;  %v1635_v11 = vld [vmem:[#allocation8 + $0xc] ss:$0 sm:$0xff] }
 0x8bb   :  { %1855 = vmatprep.mubr.msk.bf16.mxu0 %vm2094_vm0, %v2093_v0  ;;  %1848 = vmatpush3.bf16.msra.mxu0 %v1964_v14 }
 0x8bc   :  { %1849 = vmatprep.subr.bf16.mxu0 %v2093_v0 }
 0x8bf   :  { %1850 = vmatpush3.bf16.msra.mxu0 %v1965_v15 }
 0x8c0   :  { %1851 = vmatprep.subr.bf16.mxu0 %v2093_v0 }
 0x8c3   :  { %1852 = vmatpush3.bf16.msra.mxu0 %v1966_v25 }
 0x8c4   :  { %1853 = vmatprep.subr.bf16.mxu0 %v2093_v0 }
 0x8c7   :  { %1854 = vmatpush3.bf16.msra.mxu0 %v1967_v26 }
 0x8c8   :  { %1871 = vmatprep.subr.bf16.mxu0 %v2093_v0 }
 0x97a   :  { %v859_v17 = vpop.f32.mrf.mxu0 }
 0x97b   :  { %v860_v18 = vadd.f32 %v1615_v16, %v859_v17 }
 0x97c   :  { %v1833_v19 = vpop.f32.mrf.mxu0 }
 0x97d   :  { %v865_v20 = vmul.f32 0.01, %v860_v18 }
 0x97e   :  { %v862_v21 = vpop.f32.mrf.mxu0 }
 0x97f   :  { %v866_v22 = vmax.f32 %v860_v18, %v865_v20  ;;  %v1978_v20 = vld [vmem:[#allocation6 + $0x1c8] sm:$0xff]   ;;  %v1979_v21 = vld [vmem:[#allocation6 + $0x1c0] sm:$0xff]  }
 0x980   :  { %v1834_v23 = vpop.f32.mrf.mxu0 }
 0x981   :  { %v867_v24 = vpack.c.bf16 %v866_v22, %v866_v22  ;;  %v1980_v22 = vld [vmem:[#allocation6 + $0x1f8] sm:$0xff]   ;;  %v1981_v23 = vld [vmem:[#allocation6 + $0x1f0] sm:$0xff]  }
 0x983   :  { %1844 = vmatmul.mubr.msk.bf16.vlgmr.msra.gmra.mxu1 %vm170_vm3, %v867_v24  ;;  %v1637_v24 = vld [vmem:[#allocation8 + $0xd] ss:$0 sm:$0xff] }
 0x984   :  { %1867 = vmatprep.mubr.msk.bf16.mxu1 %vm2094_vm0, %v2093_v0  ;;  %1860 = vmatpush3.bf16.msra.mxu1 %v1968_v27 }
 0x985   :  { %1861 = vmatprep.subr.bf16.mxu1 %v2093_v0 }
 0x988   :  { %1862 = vmatpush3.bf16.msra.mxu1 %v1969_v28 }
 0x989   :  { %1863 = vmatprep.subr.bf16.mxu1 %v2093_v0 }
 0x98c   :  { %1864 = vmatpush3.bf16.msra.mxu1 %v1970_v38 }
 0x98d   :  { %1865 = vmatprep.subr.bf16.mxu1 %v2093_v0 }
 0x990   :  { %1866 = vmatpush3.bf16.msra.mxu1 %v1971_v39 }
 0x991   :  { %1889 = vmatprep.subr.bf16.mxu1 %v2093_v0 }
 0xa43   :  { %v943_v30 = vpop.f32.mrf.mxu1 }
 0xa44   :  { %v944_v31 = vadd.f32 %v1617_v29, %v943_v30 }
 0xa45   :  { %v1845_v32 = vpop.f32.mrf.mxu1 }
 0xa46   :  { %v949_v33 = vmul.f32 0.01, %v944_v31 }
 0xa47   :  { %v946_v34 = vpop.f32.mrf.mxu1 }
 0xa48   :  { %v950_v35 = vmax.f32 %v944_v31, %v949_v33  ;;  %v1982_v33 = vld [vmem:[#allocation6 + $0x1e8] sm:$0xff]   ;;  %v1983_v34 = vld [vmem:[#allocation6 + $0x1e0] sm:$0xff]  }
 0xa49   :  { %v1846_v36 = vpop.f32.mrf.mxu1 }
 0xa4a   :  { %v951_v37 = vpack.c.bf16 %v950_v35, %v950_v35  ;;  %v1643_v35 = vld [vmem:[#allocation8 + $0xe] ss:$0 sm:$0xff] }
 0xa4c   :  { %1856 = vmatmul.mubr.msk.bf16.vlgmr.msra.gmra.mxu0 %vm170_vm3, %v951_v37 }
 0xa4d   :  { %1873 = vmatprep.mubr.msk.bf16.mxu0 %vm2094_vm0, %v2093_v0  ;;  %1872 = vmatpush3.bf16.msra.mxu0 %v1142_v61  ;;  %v1447_v61 = vld [vmem:[#allocation6 + $0x240] sm:$0xf] }
 0xa4e   :  { %1877 = vmatprep.subr.bf16.mxu0 %v2093_v0 }
 0xb0c   :  { %v1027_v41 = vpop.f32.mrf.mxu0 }
 0xb0d   :  { %v1028_v42 = vadd.f32 %v1623_v40, %v1027_v41 }
 0xb0e   :  { %v1857_v43 = vpop.f32.mrf.mxu0 }
 0xb0f   :  { %v1033_v44 = vmul.f32 0.01, %v1028_v42 }
 0xb10   :  { %v1030_v45 = vpop.f32.mrf.mxu0 }
 0xb11   :  { %v1034_v46 = vmax.f32 %v1028_v42, %v1033_v44  ;;  %v1450_v44 = vld [vmem:[#allocation6 + $0x260] sm:$0xf] }
 0xb12   :  { %v1858_v47 = vpop.f32.mrf.mxu0  ;;  %v1455_v45 = vsel %vm85_vm1, %v1450_v44, 0 }
 0xb13   :  { %v1035_v48 = vpack.c.bf16 %v1034_v46, %v1034_v46  ;;  %v1649_v46 = vld [vmem:[#allocation8 + $0xf] ss:$0 sm:$0xff] }
 0xb15   :  { %1868 = vmatmul.mubr.msk.bf16.vlgmr.msra.gmra.mxu1 %vm170_vm3, %v1035_v48 }
 0xb16   :  { %1897 = vmatprep.mubr.msk.bf16.mxu1 %vm2094_vm0, %v2093_v0  ;;  %1890 = vmatpush3.bf16.msra.mxu1 %v1976_v9 }
 0xb17   :  { %1891 = vmatprep.subr.bf16.mxu1 %v2093_v0 }
 0xb1a   :  { %1892 = vmatpush3.bf16.msra.mxu1 %v1977_v10 }
 0xb1b   :  { %1893 = vmatprep.subr.bf16.mxu1 %v2093_v0 }
 0xb1e   :  { %1894 = vmatpush3.bf16.msra.mxu1 %v1978_v20 }
 0xb1f   :  { %1895 = vmatprep.subr.bf16.mxu1 %v2093_v0 }
 0xb22   :  { %1896 = vmatpush3.bf16.msra.mxu1 %v1979_v21 }
 0xb23   :  { %1913 = vmatprep.subr.bf16.mxu1 %v2093_v0 }
 0xbd5   :  { %v1111_v51 = vpop.f32.mrf.mxu1 }
 0xbd6   :  { %v1112_v52 = vadd.f32 %v1629_v50, %v1111_v51 }
 0xbd7   :  { %v1869_v53 = vpop.f32.mrf.mxu1 }
 0xbd8   :  { %1992 = vtanh.f32 %v1112_v52 }
 0xbd9   :  { %v1114_v55 = vpop.f32.mrf.mxu1 }
 0xbdb   :  { %v1870_v56 = vpop.f32.mrf.mxu1 }
 0xbe5   :  { %v1993_v58 = vpop.eup %1992 }
 0xbe6   :  { %v1118_v8 = vmul.f32 1.442695, %v1993_v58  ;;  %v2256_v59 = vadd.f32 %v1993_v58, %v710_v57 }
 0xbe8   :  { %1994 = vpow2.f32 %v1118_v8 }
 0xbf5   :  { %v1995_v62 = vpop.eup %1994 }
 0xbf6   :  { %1121 = vrot.lane.b32.xlu1 %v1995_v62, %s2092_s8 }
 0xc68   :  { %v1122_v63 = vpop.permute.xlu1 %1121 }
 0xc69   :  { %v1124_v1 = vmul.f32 %v1122_v63, %v2228_v7 }
 0xc6b   :  { %v1125_v2 = vadd.f32 %v1124_v1, %v1112_v52  ;;  %v1498_v1 = vsel %vm85_vm1, %v1447_v61, 0 }
 0xc6d   :  { %v1127_v3 = vpack.c.bf16 %v1125_v2, %v1125_v2 }
 0xc6f   :  { %1136 = vrot.lane.b32.xlu0 %v1127_v3, %s2095_s0 }
 0xce1   :  { %v2263_v49 = vpop.permute.xlu0 %1136 }
 0xce2   :  { %1874 = vmatmul.mubr.msk.bf16.vlgmr.msra.gmra.mxu0 %vm81_vm2, %v2263_v49 }
 0xce3   :  { %1878 = vmatpush3.bf16.msra.mxu0 %v1972_v54  ;;  %1885 = vmatprep.mubr.msk.bf16.mxu0 %vm2094_vm0, %v2093_v0 }
 0xce4   :  { %1879 = vmatprep.subr.bf16.mxu0 %v2093_v0 }
 0xce7   :  { %1880 = vmatpush3.bf16.msra.mxu0 %v1973_v4 }
 0xce8   :  { %1881 = vmatprep.subr.bf16.mxu0 %v2093_v0 }
 0xceb   :  { %1882 = vmatpush3.bf16.msra.mxu0 %v1974_v5 }
 0xcec   :  { %1883 = vmatprep.subr.bf16.mxu0 %v2093_v0 }
 0xcef   :  { %1884 = vmatpush3.bf16.msra.mxu0 %v1975_v6 }
 0xcf0   :  { %1901 = vmatprep.subr.bf16.mxu0 %v2093_v0 }
 0xda2   :  { %v1178_v12 = vpop.f32.mrf.mxu0 }
 0xda3   :  { %v1179_v13 = vadd.f32 %v1635_v11, %v1178_v12 }
 0xda4   :  { %v1875_v14 = vpop.f32.mrf.mxu0 }
 0xda5   :  { %v1184_v15 = vmul.f32 0.01, %v1179_v13 }
 0xda6   :  { %v1181_v16 = vpop.f32.mrf.mxu0 }
 0xda7   :  { %v1185_v17 = vmax.f32 %v1179_v13, %v1184_v15 }
 0xda8   :  { %v1876_v18 = vpop.f32.mrf.mxu0 }
 0xda9   :  { %v1186_v19 = vpack.c.bf16 %v1185_v17, %v1185_v17 }
 0xdab   :  { %1886 = vmatmul.mubr.msk.bf16.vlgmr.msra.gmra.mxu0 %vm170_vm3, %v1186_v19 }
 0xdac   :  { %1909 = vmatprep.mubr.msk.bf16.mxu0 %vm2094_vm0, %v2093_v0  ;;  %1902 = vmatpush3.bf16.msra.mxu0 %v1980_v22 }
 0xdad   :  { %1903 = vmatprep.subr.bf16.mxu0 %v2093_v0 }
 0xdb0   :  { %1904 = vmatpush3.bf16.msra.mxu0 %v1981_v23 }
 0xdb1   :  { %1905 = vmatprep.subr.bf16.mxu0 %v2093_v0 }
 0xdb4   :  { %1906 = vmatpush3.bf16.msra.mxu0 %v1982_v33 }
 0xdb5   :  { %1907 = vmatprep.subr.bf16.mxu0 %v2093_v0 }
 0xdb8   :  { %1908 = vmatpush3.bf16.msra.mxu0 %v1983_v34 }
 0xe6b   :  { %v1262_v25 = vpop.f32.mrf.mxu0 }
 0xe6c   :  { %v1263_v26 = vadd.f32 %v1637_v24, %v1262_v25 }
 0xe6d   :  { %v1887_v27 = vpop.f32.mrf.mxu0 }
 0xe6e   :  { %v1268_v28 = vmul.f32 0.01, %v1263_v26 }
 0xe6f   :  { %v1265_v29 = vpop.f32.mrf.mxu0 }
 0xe70   :  { %v1269_v30 = vmax.f32 %v1263_v26, %v1268_v28 }
 0xe71   :  { %v1888_v31 = vpop.f32.mrf.mxu0 }
 0xe72   :  { %v1270_v32 = vpack.c.bf16 %v1269_v30, %v1269_v30 }
 0xe74   :  { %1898 = vmatmul.mubr.msk.bf16.vlgmr.msra.gmra.mxu1 %vm170_vm3, %v1270_v32 }
 0xe75   :  { %1915 = vmatprep.mubr.msk.bf16.mxu1 %vm2094_vm0, %v2093_v0  ;;  %1914 = vmatpush3.bf16.msra.mxu1 %v1455_v45 }
 0xe76   :  { %1919 = vmatprep.subr.bf16.mxu1 %v2093_v0 }
 0xf34   :  { %v1346_v36 = vpop.f32.mrf.mxu1 }
 0xf35   :  { %v1347_v37 = vadd.f32 %v1643_v35, %v1346_v36 }
 0xf36   :  { %v1899_v38 = vpop.f32.mrf.mxu1 }
 0xf37   :  { %v1352_v39 = vmul.f32 0.01, %v1347_v37 }
 0xf38   :  { %v1349_v40 = vpop.f32.mrf.mxu1 }
 0xf39   :  { %v1353_v41 = vmax.f32 %v1347_v37, %v1352_v39 }
 0xf3a   :  { %v1900_v42 = vpop.f32.mrf.mxu1 }
 0xf3b   :  { %v1354_v43 = vpack.c.bf16 %v1353_v41, %v1353_v41 }
 0xf3d   :  { %1910 = vmatmul.mubr.msk.bf16.vlgmr.msra.gmra.mxu0 %vm170_vm3, %v1354_v43 }
 0xffd   :  { %v1430_v47 = vpop.f32.mrf.mxu0 }
 0xffe   :  { %v1431_v48 = vadd.f32 %v1649_v46, %v1430_v47 }
 0xfff   :  { %v1911_v50 = vpop.f32.mrf.mxu0 }
0x1000   :  { %1996 = vtanh.f32 %v1431_v48  ;;  %1441 = vrot.lane.b32.xlu1 %v1431_v48, %s2095_s0 }
0x1001   :  { %v1433_v51 = vpop.f32.mrf.mxu0 }
0x1003   :  { %v1912_v52 = vpop.f32.mrf.mxu0 }
0x100d   :  { %v1997_v53 = vpop.eup %1996 }
0x100e   :  { %v1445_v55 = vadd.f32 %v1997_v53, %v2256_v59  ;;  %v1437_v57 = vmul.f32 1.442695, %v1997_v53  ;;  %v1546_v59 = vstv %s2311_s3  ;;  %s2060_s3 = scalar_lea.vmem %s1557_s15, 128 }
0x100f   :  { %p2061_p1 = scmp.ne.s32.totalorder %s1557_s15, %s2060_s3  ;;  %p2066_p3 = scmp.lt.s32.totalorder %s2060_s3, %s2060_s3 }
0x1010   :  { %v1542_v56 = vsel %vm81_vm2, %v1445_v55, 0.0  ;;  %1998 = vpow2.f32 %v1437_v57 }
0x1011   :  { %1543 = vadd.xlane.f32.xlu0 %v1542_v56  ;;  %p2067_p4 = por %p2066_p3, %p2065_p2 }
0x1013   :  { %p2068_p5 = pnand %p2067_p4, %p2061_p1 }
0x101d   :  { %v1999_v58 = vpop.eup %1998 }
0x101e   :  { %v1439_v8 = vmul.f32 %v1999_v58, %v2228_v7 }
0x1072   :  { %v1442_v60 = vpop.permute.xlu1 %1441 }
0x1073   :  { %v1444_v62 = vadd.f32 %v1442_v60, %v1439_v8 }
0x1075   :  { %v1448_v63 = vpack.c.bf16 %v1444_v62, %v1444_v62 }
0x1077   :  { %1916 = vmatmul.mubr.msk.bf16.vlgmr.msra.gmra.mxu1 %vm81_vm2, %v1448_v63 }
0x1078   :  { %1920 = vmatpush3.bf16.msra.mxu1 %v1498_v1  ;;  %1921 = vmatprep.mubr.msk.bf16.mxu1 %vm2094_vm0, %v2093_v0 }
0x107f   :  { %1922 = vmatmul.mubr.msk.bf16.vlgmr.msra.gmra.mxu1 %vm81_vm2, %v2263_v49 }
0x109a   :  { %v1544_v7 = vpop.xlane.xlu0 %1543 }
0x109b   :  { %v1547_v2 = vadd.f32 %v1546_v59, %v1544_v7 }
0x109d   :  { %1549 = vst.msk [vmem:[%s2313_s5] sm:$0xff] %vm1548_vm4, %v1547_v2 }
0x1137   :  { %v1491_v3 = vpop.f32.mrf.mxu1 }
0x1139   :  { %v1917_v54 = vpop.f32.mrf.mxu1 }
0x113b   :  { %v1494_v4 = vpop.f32.mrf.mxu1 }
0x113d   :  { %v1918_v5 = vpop.f32.mrf.mxu1 }
0x113f   :  { %v1534_v0 = vpop.f32.mrf.mxu1 }
0x1140   :  { %v1535_v49 = vadd.f32 %v1534_v0, %v1491_v3 }
0x1141   :  { %v1923_v6 = vpop.f32.mrf.mxu1 }
0x1142   :  { %1541 = vst.msk [vmem:[#allocation9] sm:$0xff] %vm1540_vm5, %v1535_v49 }
0x1143   :  { %v1537_v9 = vpop.f32.mrf.mxu1 }
0x1144   :  { %2071 = shalt.err (!%p2068_p5)
}
0x1145   :  { %1559 = dma.vmem_to_hbm [thread:$0]  %s1557_s15, 128, %s2312_s4, [#allocation5]   ;;  %v1924_v10 = vpop.f32.mrf.mxu1 }
0x1146   :  { %2084 = dma.done.wait [#allocation5], 128  }
0x1147   :  { %2085 = vsyncadd [#allocation5], 4294967168 }
0x1148   :  { %1567 = vsyncpa [#allocation4], 1 }
0x1149   :  { %1568 = vsyncpa [#allocation7], 1 }
0x114a   :  { %1569 = vsyncpa [#allocation5], 1 }

</bundles_post_ra>
